<compile_context>
chip_gen: v7x
topology: tpu7x:2x2x1
jax: 0.10.0
libtpu: 0.0.40
codegen_flags: <defaults>
</compile_context>

<pallas_src>
import numpy as np
import jax
import jax.numpy as jnp
from jax import lax
from jax.experimental import pallas as pl
from jax.experimental.pallas import tpu as pltpu

NEG_SLOPE = 0.01  # F.leaky_relu default negative_slope


def _leaky(x):
    return jnp.where(x >= 0, x, NEG_SLOPE * x)


def _rows_to_lanes(a):
    """(R, C) -> (1, R*C): row r lands in lanes [r*C, (r+1)*C). Lane-concat only."""
    r = a.shape[0]
    if r == 1:
        return a
    return jnp.concatenate([a[i:i + 1, :] for i in range(r)], axis=1)


def _make_kernel(F, C, N, GP, NG, Bblk, WS, WSP):
    F2 = 2 * F
    LW = GP * N
    R_GC2 = 16   # const-slab row of the GraphConv(8,16) weights
    R_GC1 = 32   # const-slab row of the GraphConv(1,8) weights

    def kernel(x_ref, eps_ref, adj_ref, invd_ref, logs_ref,
               w11_ref, w12_ref, wml_ref, wdec_ref, wc_ref, cs_ref,
               conn_ref, small_ref):
        f32, bf16 = jnp.float32, jnp.bfloat16

        # ---- packed constants (static slices of one f32 slab) ----
        b11 = cs_ref[0:1, :F2]
        bn1s = cs_ref[1:2, :F2]
        bn1b = cs_ref[2:3, :F2]
        b12 = cs_ref[3:4, :F]
        bn2s = cs_ref[4:5, :F]
        bn2b = cs_ref[5:6, :F]
        bml = cs_ref[6:7, :F2]
        bc = cs_ref[7:8, :C]
        bdec = cs_ref[8:9, :N + 1]
        w2rel = cs_ref[R_GC2:R_GC2 + 16, 0:8]     # GraphConv2 lin_rel.weight (16,8)
        w2root = cs_ref[R_GC2:R_GC2 + 16, 8:16]   # GraphConv2 lin_root.weight (16,8)
        b2 = cs_ref[R_GC2:R_GC2 + 16, 16:17]      # GraphConv2 lin_rel.bias   (16,1)
        wrel1 = cs_ref[R_GC1:R_GC1 + 8, 0:1]      # GraphConv1 lin_rel.weight (8,1)
        brel1 = cs_ref[R_GC1:R_GC1 + 8, 1:2]      # GraphConv1 lin_rel.bias   (8,1)
        wroot1 = cs_ref[R_GC1:R_GC1 + 8, 2:3]     # GraphConv1 lin_root.weight(8,1)

        # ============ FCEncoder (eval: dropout = identity, BN folded) ============
        x = x_ref[...].astype(bf16)                                        # (Bblk, Tp)
        h1 = jnp.dot(x, w11_ref[...], preferred_element_type=f32) + b11
        h1 = _leaky(h1) * bn1s + bn1b                                      # (Bblk, 2F)
        h1 = jnp.dot(h1.astype(bf16), w12_ref[...], preferred_element_type=f32) + b12
        h1 = _leaky(h1) * bn2s + bn2b                                      # (Bblk, F)

        # fused fc21 | fc22
        hm_lv = jnp.dot(h1.astype(bf16), wml_ref[...], preferred_element_type=f32) + bml
        h_mean = hm_lv[:, :F]
        h_logvar = hm_lv[:, F:]
        h = h_mean + eps_ref[...] * jnp.exp(0.5 * h_logvar)                # reparam

        # Classifier (eval branch uses h_mean)
        y = jnp.dot(h_mean.astype(bf16), wc_ref[...], preferred_element_type=f32) + bc

        # fused decoder fc21 (F->N) | fc11 (F->1)
        dec = jnp.dot(h.astype(bf16), wdec_ref[...], preferred_element_type=f32) + bdec
        hn = _leaky(dec[:, :N])                                            # (Bblk, N)
        param = jnp.maximum(dec[:, N:N + 1], 0.0)                          # (Bblk, 1)

        # ============ BRIDGEDecoder GraphConv stage (lane-packed) ============
        # GP graphs share a 128-lane tile (lane = g*N + node) against a
        # block-diagonal adjacency -> full-width aggregation matmuls.
        for gi in range(NG):
            g0 = gi * GP
            adj_g = adj_ref[gi]                                            # (LW, LW) bf16
            invd = invd_ref[gi]                                            # (1, LW)
            hn_p = _rows_to_lanes(hn[g0:g0 + GP, :])                       # (1, LW)
            par_p = _rows_to_lanes(
                jnp.broadcast_to(param[g0:g0 + GP, :], (GP, N)))           # (1, LW)

            # GraphConv(1, 8, 'mean'): W_rel*mean_j(w_ji x_j) + b_rel + W_root*x_i
            agg1 = jnp.dot(hn_p.astype(bf16), adj_g,
                           preferred_element_type=f32) * invd              # (1, LW)
            x1 = _leaky(wrel1 * agg1 + brel1 + wroot1 * hn_p)              # (8, LW)

            # GraphConv(8, 16, 'mean'): split matmuls (no sublane concat)
            agg2 = jnp.dot(x1.astype(bf16), adj_g,
                           preferred_element_type=f32) * invd              # (8, LW)
            out2t = _leaky(
                jnp.dot(w2rel, agg2, preferred_element_type=f32) + b2
                + jnp.dot(w2root, x1, preferred_element_type=f32))         # (16, LW)

            # conn = sigmoid(out @ out^T + log(S) * param); per-graph k via a
            # transposed-LHS contraction (no XLU transpose).  The reference's
            # `* (S != 0)` mask is identically 1 for nonnegative weights -> dropped.
            ks = []
            for g in range(GP):
                o = out2t[:, g * N:(g + 1) * N]                            # (16, N)
                ks.append(lax.dot_general(
                    o, o, (((0,), (0,)), ((), ())),
                    preferred_element_type=f32))                           # (N, N)
            k_grp = jnp.concatenate(ks, axis=1)                            # (N, LW)
            conn_ref[gi] = jax.nn.sigmoid(k_grp + logs_ref[gi] * par_p)

        # ---- lane-dense small-output slab: [y | h_mean | h_logvar | param | h | 0]
        small_ref[:, 0:C] = y
        small_ref[:, C:C + F] = h_mean
        small_ref[:, C + F:C + 2 * F] = h_logvar
        small_ref[:, C + 2 * F:C + 2 * F + 1] = param
        small_ref[:, C + 2 * F + 1:WS] = h
        if WSP > WS:
            small_ref[:, WS:] = jnp.zeros((Bblk, WSP - WS), f32)

    return kernel


@jax.jit
def bridge_forward(params, x_triu, eps, adj, inv_deg):
    f32, bf16 = jnp.float32, jnp.bfloat16
    B, T = x_triu.shape
    N = adj.shape[-1]
    F = eps.shape[1]
    C = params['wc'].shape[1]
    F2 = 2 * F
    WS = C + 3 * F + 1
    WSP = ((WS + 127) // 128) * 128            # pad small slab to 128 lanes
    TP = ((T + 127) // 128) * 128              # pad triu feature dim to 128 lanes
    CW = ((max(F2, N + 1, C, 17) + 127) // 128) * 128

    # GP graphs packed per 128-lane GraphConv tile; batch block = NG * GP graphs.
    GP = max(1, 128 // N)
    LW = GP * N
    blk = GP
    while blk * 2 <= 128 and blk * 4 <= B:     # grow block but keep >= 2 grid steps
        blk *= 2
    NG = blk // GP
    Bp = ((B + blk - 1) // blk) * blk
    n_groups = Bp // GP
    n_steps = Bp // blk

    # -------------------------- host-side packing --------------------------
    xp = jnp.pad(x_triu.astype(f32), ((0, Bp - B), (0, TP - T)))
    epsp = jnp.pad(eps.astype(f32), ((0, Bp - B), (0, 0)))
    adjp = jnp.pad(adj.astype(f32), ((0, Bp - B), (0, 0), (0, 0)))
    invp = jnp.pad(inv_deg.astype(f32), ((0, Bp - B), (0, 0)))

    # block-diagonal adjacency, lane-packed log(S) and inverse in-degree
    adj_g = adjp.reshape(n_groups, GP, N, N)
    eye_g = jnp.eye(GP, dtype=f32)
    adj_bd = (adj_g[:, :, None, :, :] * eye_g[None, :, :, None, None])
    adj_bd = adj_bd.transpose(0, 1, 3, 2, 4).reshape(n_groups, LW, LW).astype(bf16)
    logs = jnp.log(adjp + 1e-10).reshape(n_groups, GP, N, N)
    logs = logs.transpose(0, 2, 1, 3).reshape(n_groups, N, LW)
    invd = invp.reshape(n_groups, 1, LW)

    # fused / padded bf16 MXU weights (accumulation stays f32 in-kernel)
    w11p = jnp.pad(params['w11'], ((0, TP - T), (0, 0))).astype(bf16)     # (TP, 2F)
    w12 = params['w12'].astype(bf16)                                      # (2F, F)
    wml = jnp.concatenate([params['w21'], params['w22']], axis=1).astype(bf16)
    wdec = jnp.concatenate([params['wd21'], params['wd11'].T], axis=1).astype(bf16)
    wc = params['wc'].astype(bf16)                                        # (F, C)

    # one f32 constant slab: bias / folded-BN rows + tiny GraphConv weights
    def row(v):
        v = jnp.reshape(v, (1, -1)).astype(f32)
        return jnp.pad(v, ((0, 0), (0, CW - v.shape[1])))

    vec = jnp.concatenate([
        row(params['b11']), row(params['bn1_scale']), row(params['bn1_shift']),
        row(params['b12']), row(params['bn2_scale']), row(params['bn2_shift']),
        row(jnp.concatenate([params['b21'], params['b22']], axis=1)),
        row(params['bc']),
        row(jnp.concatenate([params['bd21'], params['bd11']], axis=1)),
    ], axis=0)
    vec = jnp.pad(vec, ((0, 16 - vec.shape[0]), (0, 0)))                   # rows 0..15
    gc2 = jnp.zeros((16, CW), f32)
    gc2 = gc2.at[:, 0:8].set(params['wrel2'].T)
    gc2 = gc2.at[:, 8:16].set(params['wroot2'].T)
    gc2 = gc2.at[:, 16:17].set(params['brel2'].T)                          # rows 16..31
    gc1 = jnp.zeros((8, CW), f32)
    gc1 = gc1.at[:, 0:1].set(params['wrel1'].T)
    gc1 = gc1.at[:, 1:2].set(params['brel1'].T)
    gc1 = gc1.at[:, 2:3].set(params['wroot1'].T)                           # rows 32..39
    cslab = jnp.concatenate([vec, gc2, gc1], axis=0)                       # (40, CW)

    const2 = lambda i: (0, 0)
    bat2 = lambda i: (i, 0)
    bat3 = lambda i: (i, 0, 0)

    in_specs = [
        pl.BlockSpec((blk, TP), bat2),            # x (padded triu features)
        pl.BlockSpec((blk, F), bat2),             # eps
        pl.BlockSpec((NG, LW, LW), bat3),         # block-diag adjacency (bf16)
        pl.BlockSpec((NG, 1, LW), bat3),          # 1 / max(in_degree, 1), lane-packed
        pl.BlockSpec((NG, N, LW), bat3),          # log(adj + 1e-10), lane-packed
        pl.BlockSpec((TP, F2), const2),           # w11 (row-padded, bf16)
        pl.BlockSpec((F2, F), const2),            # w12
        pl.BlockSpec((F, F2), const2),            # [w21 | w22]
        pl.BlockSpec((F, N + 1), const2),         # [wd21 | wd11^T]
        pl.BlockSpec((F, C), const2),             # wc
        pl.BlockSpec((cslab.shape[0], CW), const2),  # const slab
    ]
    out_specs = (
        pl.BlockSpec((NG, N, LW), bat3),          # conn, group-packed lanes
        pl.BlockSpec((blk, WSP), bat2),           # [y | h_mean | h_logvar | param | h]
    )
    out_shape = (
        jax.ShapeDtypeStruct((n_groups, N, LW), f32),
        jax.ShapeDtypeStruct((Bp, WSP), f32),
    )

    flops = (2 * Bp * (TP * F2 + F2 * F + F * F2 + F * C + F * (N + 1))
             + 2 * n_groups * (9 * LW * LW + 2 * 16 * 8 * LW + GP * 16 * N * N))
    transcendentals = Bp * (F + N * N)
    bytes_accessed = (4 * (Bp * (TP + F + WSP) + n_groups * (N + 2) * LW)
                      + 2 * (n_groups * LW * LW + TP * F2 + F2 * F + F * F2
                             + F * (N + 1) + F * C)
                      + 4 * cslab.size)

    conn_p, small = pl.pallas_call(
        _make_kernel(F, C, N, GP, NG, blk, WS, WSP),
        grid_spec=pltpu.PrefetchScalarGridSpec(
            num_scalar_prefetch=0,
            grid=(n_steps,),
            in_specs=in_specs,
            out_specs=out_specs,
        ),
        out_shape=out_shape,
        compiler_params=pltpu.CompilerParams(
            dimension_semantics=("parallel",),
            vmem_limit_bytes=32 * 1024 * 1024,
        ),
        cost_estimate=pl.CostEstimate(
            flops=int(flops), transcendentals=int(transcendentals),
            bytes_accessed=int(bytes_accessed)),
    )(xp, epsp, adj_bd, invd, logs, w11p, w12, wml, wdec, wc, cslab)

    # ---- host-side unpack of the lane-dense outputs ----
    conn = conn_p.reshape(n_groups, N, GP, N).transpose(0, 2, 1, 3)
    conn = conn.reshape(Bp, N, N)[:B]
    small = small[:B]
    y = small[:, :C]
    h_mean = small[:, C:C + F]
    h_logvar = small[:, C + F:C + 2 * F]
    param = small[:, C + 2 * F:C + 2 * F + 1]
    h = small[:, C + 2 * F + 1:WS]
    return conn, y, h_mean, h_logvar, param, h


# ------------------------------- host-side glue -------------------------------
def init_params(key, N, F, C, T):
    keys = iter(jax.random.split(key, 24))

    def lin(fan_in, shape):
        bound = 1.0 / np.sqrt(fan_in)
        return jax.random.uniform(next(keys), shape, jnp.float32, -bound, bound)

    p = {}
    # FCEncoder
    p['w11'] = lin(T, (T, 2 * F)); p['b11'] = lin(T, (1, 2 * F))
    p['w12'] = lin(2 * F, (2 * F, F)); p['b12'] = lin(2 * F, (1, F))
    p['w21'] = lin(F, (F, F)); p['b21'] = lin(F, (1, F))
    p['w22'] = lin(F, (F, F)); p['b22'] = lin(F, (1, F))
    # BatchNorm1d (eval, default init): gamma=1, beta=0, running_mean=0, running_var=1
    bn_eps = 1e-5
    p['bn1_scale'] = jnp.full((1, 2 * F), 1.0 / np.sqrt(1.0 + bn_eps), jnp.float32)
    p['bn1_shift'] = jnp.zeros((1, 2 * F), jnp.float32)
    p['bn2_scale'] = jnp.full((1, F), 1.0 / np.sqrt(1.0 + bn_eps), jnp.float32)
    p['bn2_shift'] = jnp.zeros((1, F), jnp.float32)
    # Classifier
    p['wc'] = lin(F, (F, C)); p['bc'] = lin(F, (1, C))
    # Decoder fc11 (F -> 1), fc21 (F -> N)
    p['wd11'] = lin(F, (1, F)); p['bd11'] = lin(F, (1, 1))
    p['wd21'] = lin(F, (F, N)); p['bd21'] = lin(F, (1, N))
    # GraphConv(1, 8): lin_rel (bias), lin_root (no bias)
    p['wrel1'] = lin(1, (1, 8)); p['brel1'] = lin(1, (1, 8)); p['wroot1'] = lin(1, (1, 8))
    # GraphConv(8, 16)
    p['wrel2'] = lin(8, (8, 16)); p['brel2'] = lin(8, (1, 16)); p['wroot2'] = lin(8, (8, 16))
    return p


def build_graph(B, N, seed=0):
    """Ring + skip edges inside each graph of the batched graph (no cross edges)."""
    rng = np.random.default_rng(seed)
    src_l, dst_l = [], []
    for i in range(N):
        src_l += [i, (i + 1) % N, i]
        dst_l += [(i + 1) % N, i, (i + 2) % N]
    src_l = np.asarray(src_l); dst_l = np.asarray(dst_l)
    src = np.concatenate([src_l + b * N for b in range(B)])
    dst = np.concatenate([dst_l + b * N for b in range(B)])
    edge_index = np.stack([src, dst]).astype(np.int32)
    edge_attr = rng.uniform(0.2, 1.0, size=edge_index.shape[1]).astype(np.float32)
    return edge_index, edge_attr, len(src_l)   # edges per graph


def densify(edge_index, edge_attr, B, N):
    """to_dense_adj(edge_index, batch, edge_attr) + inverse in-degree for 'mean'."""
    adj = np.zeros((B, N, N), np.float32)
    deg = np.zeros((B, N), np.float32)
    src, dst = edge_index
    np.add.at(adj, (src // N, src % N, dst % N), edge_attr)
    np.add.at(deg, (dst // N, dst % N), 1.0)
    inv_deg = (1.0 / np.maximum(deg, 1.0)).astype(np.float32)
    return adj, inv_deg


if __name__ == "__main__":
    # in_channels == num_nodes == 16, feature_channels=32, out_channels=4,
    # num_graphs=16 -> two "parallel" grid steps of 8 lane-packed graphs each.
    B, N, F, C = 16, 16, 32, 4
    T = N * (N - 1) // 2

    key = jax.random.PRNGKey(0)
    k_x, k_eps, k_p = jax.random.split(key, 3)

    # data.x.view(num_graphs, N, N) and upper-triangular feature extraction
    x_full = jax.random.normal(k_x, (B, N, N), jnp.float32)
    iu = np.triu_indices(N, k=1)
    x_triu = x_full[:, iu[0], iu[1]].reshape(B, T)

    # reparameterization noise (torch.randn_like), generated deterministically
    eps = jax.random.normal(k_eps, (B, F), jnp.float32)

    # graph S = (edge_index, edge_attr, edges_per_graph) -> densified adjacency
    edge_index, edge_attr, e_per = build_graph(B, N)
    edge_index = edge_index[:, : e_per * B]          # S[0][:, :S[2]*num_graphs]
    edge_attr = edge_attr[: e_per * B]               # S[1][:S[2]*num_graphs]
    adj_np, inv_deg_np = densify(edge_index, edge_attr, B, N)
    adj = jnp.asarray(adj_np)
    inv_deg = jnp.asarray(inv_deg_np)

    params = init_params(k_p, N, F, C, T)

    outs = bridge_forward(params, x_triu, eps, adj, inv_deg)
    outs = jax.block_until_ready(outs)
    conn_est, y, h_mean, h_logvar, param, h = outs

    assert conn_est.shape == (B, N, N) and y.shape == (B, C)
    assert h_mean.shape == (B, F) and h_logvar.shape == (B, F)
    assert param.shape == (B, 1) and h.shape == (B, F)
    assert all(bool(jnp.all(jnp.isfinite(o))) for o in outs)
    print("KERNEL_OK")
</pallas_src>

<mosaic_0001>
module attributes {stable_mosaic.version = 11 : i64} {
  func.func @kernel(%arg0: i32, %arg1: memref<8x128xf32, #tpu.memory_space<vmem>>, %arg2: memref<8x32xf32, #tpu.memory_space<vmem>>, %arg3: memref<1x128x128xbf16, #tpu.memory_space<vmem>>, %arg4: memref<1x1x128xf32, #tpu.memory_space<vmem>>, %arg5: memref<1x16x128xf32, #tpu.memory_space<vmem>>, %arg6: memref<128x64xbf16, #tpu.memory_space<vmem>>, %arg7: memref<64x32xbf16, #tpu.memory_space<vmem>>, %arg8: memref<32x64xbf16, #tpu.memory_space<vmem>>, %arg9: memref<32x17xbf16, #tpu.memory_space<vmem>>, %arg10: memref<32x4xbf16, #tpu.memory_space<vmem>>, %arg11: memref<40x128xf32, #tpu.memory_space<vmem>>, %arg12: memref<1x16x128xf32, #tpu.memory_space<vmem>>, %arg13: memref<8x128xf32, #tpu.memory_space<vmem>>) attributes {dimension_semantics = [#tpu.dimension_semantics<parallel>], iteration_bounds = array<i64: 2>, scalar_prefetch = 0 : i64, scratch_operands = 0 : i64, tpu.core_type = #tpu.core_type<tc>, window_params = [{transform_indices = @transform_0, window_bounds = array<i64: 8, 128>}, {transform_indices = @transform_1, window_bounds = array<i64: 8, 32>}, {transform_indices = @transform_2, window_bounds = array<i64: 1, 128, 128>}, {transform_indices = @transform_3, window_bounds = array<i64: 1, 1, 128>}, {transform_indices = @transform_4, window_bounds = array<i64: 1, 16, 128>}, {pipeline_mode = #tpu.pipeline_mode<synchronous>, transform_indices = @transform_5, window_bounds = array<i64: 128, 64>}, {pipeline_mode = #tpu.pipeline_mode<synchronous>, transform_indices = @transform_6, window_bounds = array<i64: 64, 32>}, {pipeline_mode = #tpu.pipeline_mode<synchronous>, transform_indices = @transform_7, window_bounds = array<i64: 32, 64>}, {pipeline_mode = #tpu.pipeline_mode<synchronous>, transform_indices = @transform_8, window_bounds = array<i64: 32, 17>}, {pipeline_mode = #tpu.pipeline_mode<synchronous>, transform_indices = @transform_9, window_bounds = array<i64: 32, 4>}, {pipeline_mode = #tpu.pipeline_mode<synchronous>, transform_indices = @transform_10, window_bounds = array<i64: 40, 128>}, {transform_indices = @transform_11, window_bounds = array<i64: 1, 16, 128>}, {transform_indices = @transform_12, window_bounds = array<i64: 8, 128>}]} {
    %c0 = arith.constant 0 : index
    %c0_0 = arith.constant 0 : index
    %0 = vector.load %arg11[%c0, %c0_0] : memref<40x128xf32, #tpu.memory_space<vmem>>, vector<1x64xf32>
    %c1 = arith.constant 1 : index
    %c0_1 = arith.constant 0 : index
    %1 = vector.load %arg11[%c1, %c0_1] : memref<40x128xf32, #tpu.memory_space<vmem>>, vector<1x64xf32>
    %c2 = arith.constant 2 : index
    %c0_2 = arith.constant 0 : index
    %2 = vector.load %arg11[%c2, %c0_2] : memref<40x128xf32, #tpu.memory_space<vmem>>, vector<1x64xf32>
    %c3 = arith.constant 3 : index
    %c0_3 = arith.constant 0 : index
    %3 = vector.load %arg11[%c3, %c0_3] : memref<40x128xf32, #tpu.memory_space<vmem>>, vector<1x32xf32>
    %c4 = arith.constant 4 : index
    %c0_4 = arith.constant 0 : index
    %4 = vector.load %arg11[%c4, %c0_4] : memref<40x128xf32, #tpu.memory_space<vmem>>, vector<1x32xf32>
    %c5 = arith.constant 5 : index
    %c0_5 = arith.constant 0 : index
    %5 = vector.load %arg11[%c5, %c0_5] : memref<40x128xf32, #tpu.memory_space<vmem>>, vector<1x32xf32>
    %c6 = arith.constant 6 : index
    %c0_6 = arith.constant 0 : index
    %6 = vector.load %arg11[%c6, %c0_6] : memref<40x128xf32, #tpu.memory_space<vmem>>, vector<1x64xf32>
    %c7 = arith.constant 7 : index
    %c0_7 = arith.constant 0 : index
    %7 = vector.load %arg11[%c7, %c0_7] : memref<40x128xf32, #tpu.memory_space<vmem>>, vector<1x4xf32>
    %c8 = arith.constant 8 : index
    %c0_8 = arith.constant 0 : index
    %8 = vector.load %arg11[%c8, %c0_8] : memref<40x128xf32, #tpu.memory_space<vmem>>, vector<1x17xf32>
    %c16 = arith.constant 16 : index
    %c0_9 = arith.constant 0 : index
    %9 = vector.load %arg11[%c16, %c0_9] : memref<40x128xf32, #tpu.memory_space<vmem>>, vector<16x8xf32>
    %c16_10 = arith.constant 16 : index
    %c8_11 = arith.constant 8 : index
    %10 = vector.load %arg11[%c16_10, %c8_11] : memref<40x128xf32, #tpu.memory_space<vmem>>, vector<16x8xf32>
    %c16_12 = arith.constant 16 : index
    %c16_13 = arith.constant 16 : index
    %11 = vector.load %arg11[%c16_12, %c16_13] : memref<40x128xf32, #tpu.memory_space<vmem>>, vector<16x1xf32>
    %c32 = arith.constant 32 : index
    %c0_14 = arith.constant 0 : index
    %12 = vector.load %arg11[%c32, %c0_14] : memref<40x128xf32, #tpu.memory_space<vmem>>, vector<8x1xf32>
    %c32_15 = arith.constant 32 : index
    %c1_16 = arith.constant 1 : index
    %13 = vector.load %arg11[%c32_15, %c1_16] : memref<40x128xf32, #tpu.memory_space<vmem>>, vector<8x1xf32>
    %c32_17 = arith.constant 32 : index
    %c2_18 = arith.constant 2 : index
    %14 = vector.load %arg11[%c32_17, %c2_18] : memref<40x128xf32, #tpu.memory_space<vmem>>, vector<8x1xf32>
    %c0_19 = arith.constant 0 : index
    %c0_20 = arith.constant 0 : index
    %15 = vector.load %arg1[%c0_19, %c0_20] : memref<8x128xf32, #tpu.memory_space<vmem>>, vector<8x128xf32>
    %16 = arith.truncf %15 : vector<8x128xf32> to vector<8x128xbf16>
    %c0_21 = arith.constant 0 : index
    %c0_22 = arith.constant 0 : index
    %17 = vector.load %arg6[%c0_21, %c0_22] : memref<128x64xbf16, #tpu.memory_space<vmem>>, vector<128x64xbf16>
    %cst = arith.constant dense<0.000000e+00> : vector<8x64xf32>
    %18 = tpu.matmul %16, %17, %cst {dimension_numbers = #tpu.dot_dimension_numbers<[1], [0], [0], [1], [0, 0, 1, 1], [], []>} : vector<8x128xbf16>, vector<128x64xbf16>, vector<8x64xf32> -> vector<8x64xf32>
    %19 = vector.broadcast %0 : vector<1x64xf32> to vector<8x64xf32>
    %20 = arith.addf %18, %19 : vector<8x64xf32>
    %cst_23 = arith.constant 0.000000e+00 : f32
    %21 = vector.broadcast %cst_23 : f32 to vector<8x64xf32>
    %22 = arith.cmpf oge, %20, %21 : vector<8x64xf32>
    %cst_24 = arith.constant 0.00999999977 : f32
    %23 = vector.broadcast %cst_24 : f32 to vector<8x64xf32>
    %24 = arith.mulf %23, %20 : vector<8x64xf32>
    %25 = arith.select %22, %20, %24 : vector<8x64xi1>, vector<8x64xf32>
    %26 = vector.broadcast %1 : vector<1x64xf32> to vector<8x64xf32>
    %27 = arith.mulf %25, %26 : vector<8x64xf32>
    %28 = vector.broadcast %2 : vector<1x64xf32> to vector<8x64xf32>
    %29 = arith.addf %27, %28 : vector<8x64xf32>
    %30 = arith.truncf %29 : vector<8x64xf32> to vector<8x64xbf16>
    %c0_25 = arith.constant 0 : index
    %c0_26 = arith.constant 0 : index
    %31 = vector.load %arg7[%c0_25, %c0_26] : memref<64x32xbf16, #tpu.memory_space<vmem>>, vector<64x32xbf16>
    %cst_27 = arith.constant dense<0.000000e+00> : vector<8x32xf32>
    %32 = tpu.matmul %30, %31, %cst_27 {dimension_numbers = #tpu.dot_dimension_numbers<[1], [0], [0], [1], [0, 0, 1, 1], [], []>} : vector<8x64xbf16>, vector<64x32xbf16>, vector<8x32xf32> -> vector<8x32xf32>
    %33 = vector.broadcast %3 : vector<1x32xf32> to vector<8x32xf32>
    %34 = arith.addf %32, %33 : vector<8x32xf32>
    %cst_28 = arith.constant 0.000000e+00 : f32
    %35 = vector.broadcast %cst_28 : f32 to vector<8x32xf32>
    %36 = arith.cmpf oge, %34, %35 : vector<8x32xf32>
    %cst_29 = arith.constant 0.00999999977 : f32
    %37 = vector.broadcast %cst_29 : f32 to vector<8x32xf32>
    %38 = arith.mulf %37, %34 : vector<8x32xf32>
    %39 = arith.select %36, %34, %38 : vector<8x32xi1>, vector<8x32xf32>
    %40 = vector.broadcast %4 : vector<1x32xf32> to vector<8x32xf32>
    %41 = arith.mulf %39, %40 : vector<8x32xf32>
    %42 = vector.broadcast %5 : vector<1x32xf32> to vector<8x32xf32>
    %43 = arith.addf %41, %42 : vector<8x32xf32>
    %44 = arith.truncf %43 : vector<8x32xf32> to vector<8x32xbf16>
    %c0_30 = arith.constant 0 : index
    %c0_31 = arith.constant 0 : index
    %45 = vector.load %arg8[%c0_30, %c0_31] : memref<32x64xbf16, #tpu.memory_space<vmem>>, vector<32x64xbf16>
    %cst_32 = arith.constant dense<0.000000e+00> : vector<8x64xf32>
    %46 = tpu.matmul %44, %45, %cst_32 {dimension_numbers = #tpu.dot_dimension_numbers<[1], [0], [0], [1], [0, 0, 1, 1], [], []>} : vector<8x32xbf16>, vector<32x64xbf16>, vector<8x64xf32> -> vector<8x64xf32>
    %47 = vector.broadcast %6 : vector<1x64xf32> to vector<8x64xf32>
    %48 = arith.addf %46, %47 : vector<8x64xf32>
    %49 = vector.extract_strided_slice %48 {offsets = [0, 0], sizes = [8, 32], strides = [1, 1]} : vector<8x64xf32> to vector<8x32xf32>
    %50 = vector.extract_strided_slice %48 {offsets = [0, 32], sizes = [8, 32], strides = [1, 1]} : vector<8x64xf32> to vector<8x32xf32>
    %c0_33 = arith.constant 0 : index
    %c0_34 = arith.constant 0 : index
    %51 = vector.load %arg2[%c0_33, %c0_34] : memref<8x32xf32, #tpu.memory_space<vmem>>, vector<8x32xf32>
    %cst_35 = arith.constant 5.000000e-01 : f32
    %52 = vector.broadcast %cst_35 : f32 to vector<8x32xf32>
    %53 = arith.mulf %52, %50 : vector<8x32xf32>
    %54 = math.exp %53 : vector<8x32xf32>
    %55 = arith.mulf %51, %54 : vector<8x32xf32>
    %56 = arith.addf %49, %55 : vector<8x32xf32>
    %57 = arith.truncf %49 : vector<8x32xf32> to vector<8x32xbf16>
    %c0_36 = arith.constant 0 : index
    %c0_37 = arith.constant 0 : index
    %58 = vector.load %arg10[%c0_36, %c0_37] : memref<32x4xbf16, #tpu.memory_space<vmem>>, vector<32x4xbf16>
    %cst_38 = arith.constant dense<0.000000e+00> : vector<8x4xf32>
    %59 = tpu.matmul %57, %58, %cst_38 {dimension_numbers = #tpu.dot_dimension_numbers<[1], [0], [0], [1], [0, 0, 1, 1], [], []>} : vector<8x32xbf16>, vector<32x4xbf16>, vector<8x4xf32> -> vector<8x4xf32>
    %60 = vector.broadcast %7 : vector<1x4xf32> to vector<8x4xf32>
    %61 = arith.addf %59, %60 : vector<8x4xf32>
    %62 = arith.truncf %56 : vector<8x32xf32> to vector<8x32xbf16>
    %c0_39 = arith.constant 0 : index
    %c0_40 = arith.constant 0 : index
    %63 = vector.load %arg9[%c0_39, %c0_40] : memref<32x17xbf16, #tpu.memory_space<vmem>>, vector<32x17xbf16>
    %cst_41 = arith.constant dense<0.000000e+00> : vector<8x17xf32>
    %64 = tpu.matmul %62, %63, %cst_41 {dimension_numbers = #tpu.dot_dimension_numbers<[1], [0], [0], [1], [0, 0, 1, 1], [], []>} : vector<8x32xbf16>, vector<32x17xbf16>, vector<8x17xf32> -> vector<8x17xf32>
    %65 = vector.broadcast %8 : vector<1x17xf32> to vector<8x17xf32>
    %66 = arith.addf %64, %65 : vector<8x17xf32>
    %67 = vector.extract_strided_slice %66 {offsets = [0, 0], sizes = [8, 16], strides = [1, 1]} : vector<8x17xf32> to vector<8x16xf32>
    %cst_42 = arith.constant 0.000000e+00 : f32
    %68 = vector.broadcast %cst_42 : f32 to vector<8x16xf32>
    %69 = arith.cmpf oge, %67, %68 : vector<8x16xf32>
    %cst_43 = arith.constant 0.00999999977 : f32
    %70 = vector.broadcast %cst_43 : f32 to vector<8x16xf32>
    %71 = arith.mulf %70, %67 : vector<8x16xf32>
    %72 = arith.select %69, %67, %71 : vector<8x16xi1>, vector<8x16xf32>
    %73 = vector.extract_strided_slice %66 {offsets = [0, 16], sizes = [8, 1], strides = [1, 1]} : vector<8x17xf32> to vector<8x1xf32>
    %cst_44 = arith.constant 0.000000e+00 : f32
    %74 = vector.broadcast %cst_44 : f32 to vector<8x1xf32>
    %75 = arith.maximumf %73, %74 : vector<8x1xf32>
    %c0_45 = arith.constant 0 : index
    %c0_46 = arith.constant 0 : index
    %c0_47 = arith.constant 0 : index
    %76 = vector.load %arg3[%c0_45, %c0_46, %c0_47] : memref<1x128x128xbf16, #tpu.memory_space<vmem>>, vector<1x128x128xbf16>
    %77 = vector.shape_cast %76 : vector<1x128x128xbf16> to vector<128x128xbf16>
    %c0_48 = arith.constant 0 : index
    %c0_49 = arith.constant 0 : index
    %c0_50 = arith.constant 0 : index
    %78 = vector.load %arg4[%c0_48, %c0_49, %c0_50] : memref<1x1x128xf32, #tpu.memory_space<vmem>>, vector<1x1x128xf32>
    %79 = vector.shape_cast %78 : vector<1x1x128xf32> to vector<1x128xf32>
    %80 = vector.extract_strided_slice %72 {offsets = [0, 0], sizes = [1, 16], strides = [1, 1]} : vector<8x16xf32> to vector<1x16xf32>
    %81 = vector.extract_strided_slice %72 {offsets = [1, 0], sizes = [1, 16], strides = [1, 1]} : vector<8x16xf32> to vector<1x16xf32>
    %82 = vector.extract_strided_slice %72 {offsets = [2, 0], sizes = [1, 16], strides = [1, 1]} : vector<8x16xf32> to vector<1x16xf32>
    %83 = vector.extract_strided_slice %72 {offsets = [3, 0], sizes = [1, 16], strides = [1, 1]} : vector<8x16xf32> to vector<1x16xf32>
    %84 = vector.extract_strided_slice %72 {offsets = [4, 0], sizes = [1, 16], strides = [1, 1]} : vector<8x16xf32> to vector<1x16xf32>
    %85 = vector.extract_strided_slice %72 {offsets = [5, 0], sizes = [1, 16], strides = [1, 1]} : vector<8x16xf32> to vector<1x16xf32>
    %86 = vector.extract_strided_slice %72 {offsets = [6, 0], sizes = [1, 16], strides = [1, 1]} : vector<8x16xf32> to vector<1x16xf32>
    %87 = vector.extract_strided_slice %72 {offsets = [7, 0], sizes = [1, 16], strides = [1, 1]} : vector<8x16xf32> to vector<1x16xf32>
    %88 = tpu.concatenate %80, %81, %82, %83, %84, %85, %86, %87 in 1 : vector<1x16xf32>, vector<1x16xf32>, vector<1x16xf32>, vector<1x16xf32>, vector<1x16xf32>, vector<1x16xf32>, vector<1x16xf32>, vector<1x16xf32> -> vector<1x128xf32>
    %89 = vector.shape_cast %75 : vector<8x1xf32> to vector<8x1xf32>
    %90 = vector.broadcast %89 : vector<8x1xf32> to vector<8x16xf32>
    %91 = vector.extract_strided_slice %90 {offsets = [0, 0], sizes = [1, 16], strides = [1, 1]} : vector<8x16xf32> to vector<1x16xf32>
    %92 = vector.extract_strided_slice %90 {offsets = [1, 0], sizes = [1, 16], strides = [1, 1]} : vector<8x16xf32> to vector<1x16xf32>
    %93 = vector.extract_strided_slice %90 {offsets = [2, 0], sizes = [1, 16], strides = [1, 1]} : vector<8x16xf32> to vector<1x16xf32>
    %94 = vector.extract_strided_slice %90 {offsets = [3, 0], sizes = [1, 16], strides = [1, 1]} : vector<8x16xf32> to vector<1x16xf32>
    %95 = vector.extract_strided_slice %90 {offsets = [4, 0], sizes = [1, 16], strides = [1, 1]} : vector<8x16xf32> to vector<1x16xf32>
    %96 = vector.extract_strided_slice %90 {offsets = [5, 0], sizes = [1, 16], strides = [1, 1]} : vector<8x16xf32> to vector<1x16xf32>
    %97 = vector.extract_strided_slice %90 {offsets = [6, 0], sizes = [1, 16], strides = [1, 1]} : vector<8x16xf32> to vector<1x16xf32>
    %98 = vector.extract_strided_slice %90 {offsets = [7, 0], sizes = [1, 16], strides = [1, 1]} : vector<8x16xf32> to vector<1x16xf32>
    %99 = tpu.concatenate %91, %92, %93, %94, %95, %96, %97, %98 in 1 : vector<1x16xf32>, vector<1x16xf32>, vector<1x16xf32>, vector<1x16xf32>, vector<1x16xf32>, vector<1x16xf32>, vector<1x16xf32>, vector<1x16xf32> -> vector<1x128xf32>
    %100 = arith.truncf %88 : vector<1x128xf32> to vector<1x128xbf16>
    %cst_51 = arith.constant dense<0.000000e+00> : vector<1x128xf32>
    %101 = tpu.matmul %100, %77, %cst_51 {dimension_numbers = #tpu.dot_dimension_numbers<[1], [0], [0], [1], [0, 0, 1, 1], [], []>} : vector<1x128xbf16>, vector<128x128xbf16>, vector<1x128xf32> -> vector<1x128xf32>
    %102 = arith.mulf %101, %79 : vector<1x128xf32>
    %103 = vector.broadcast %12 : vector<8x1xf32> to vector<8x128xf32>
    %104 = vector.broadcast %102 : vector<1x128xf32> to vector<8x128xf32>
    %105 = arith.mulf %103, %104 : vector<8x128xf32>
    %106 = vector.broadcast %13 : vector<8x1xf32> to vector<8x128xf32>
    %107 = arith.addf %105, %106 : vector<8x128xf32>
    %108 = vector.broadcast %14 : vector<8x1xf32> to vector<8x128xf32>
    %109 = vector.broadcast %88 : vector<1x128xf32> to vector<8x128xf32>
    %110 = arith.mulf %108, %109 : vector<8x128xf32>
    %111 = arith.addf %107, %110 : vector<8x128xf32>
    %cst_52 = arith.constant 0.000000e+00 : f32
    %112 = vector.broadcast %cst_52 : f32 to vector<8x128xf32>
    %113 = arith.cmpf oge, %111, %112 : vector<8x128xf32>
    %cst_53 = arith.constant 0.00999999977 : f32
    %114 = vector.broadcast %cst_53 : f32 to vector<8x128xf32>
    %115 = arith.mulf %114, %111 : vector<8x128xf32>
    %116 = arith.select %113, %111, %115 : vector<8x128xi1>, vector<8x128xf32>
    %117 = arith.truncf %116 : vector<8x128xf32> to vector<8x128xbf16>
    %cst_54 = arith.constant dense<0.000000e+00> : vector<8x128xf32>
    %118 = tpu.matmul %117, %77, %cst_54 {dimension_numbers = #tpu.dot_dimension_numbers<[1], [0], [0], [1], [0, 0, 1, 1], [], []>} : vector<8x128xbf16>, vector<128x128xbf16>, vector<8x128xf32> -> vector<8x128xf32>
    %119 = vector.broadcast %79 : vector<1x128xf32> to vector<8x128xf32>
    %120 = arith.mulf %118, %119 : vector<8x128xf32>
    %cst_55 = arith.constant dense<0.000000e+00> : vector<16x128xf32>
    %121 = tpu.matmul %9, %120, %cst_55 {dimension_numbers = #tpu.dot_dimension_numbers<[1], [0], [0], [1], [0, 0, 1, 1], [], []>} : vector<16x8xf32>, vector<8x128xf32>, vector<16x128xf32> -> vector<16x128xf32>
    %122 = vector.broadcast %11 : vector<16x1xf32> to vector<16x128xf32>
    %123 = arith.addf %121, %122 : vector<16x128xf32>
    %cst_56 = arith.constant dense<0.000000e+00> : vector<16x128xf32>
    %124 = tpu.matmul %10, %116, %cst_56 {dimension_numbers = #tpu.dot_dimension_numbers<[1], [0], [0], [1], [0, 0, 1, 1], [], []>} : vector<16x8xf32>, vector<8x128xf32>, vector<16x128xf32> -> vector<16x128xf32>
    %125 = arith.addf %123, %124 : vector<16x128xf32>
    %cst_57 = arith.constant 0.000000e+00 : f32
    %126 = vector.broadcast %cst_57 : f32 to vector<16x128xf32>
    %127 = arith.cmpf oge, %125, %126 : vector<16x128xf32>
    %cst_58 = arith.constant 0.00999999977 : f32
    %128 = vector.broadcast %cst_58 : f32 to vector<16x128xf32>
    %129 = arith.mulf %128, %125 : vector<16x128xf32>
    %130 = arith.select %127, %125, %129 : vector<16x128xi1>, vector<16x128xf32>
    %131 = vector.extract_strided_slice %130 {offsets = [0, 0], sizes = [16, 16], strides = [1, 1]} : vector<16x128xf32> to vector<16x16xf32>
    %cst_59 = arith.constant dense<0.000000e+00> : vector<16x16xf32>
    %132 = tpu.matmul %131, %131, %cst_59 {dimension_numbers = #tpu.dot_dimension_numbers<[0], [0], [1], [1], [0, 1, 1, 1], [], []>} : vector<16x16xf32>, vector<16x16xf32>, vector<16x16xf32> -> vector<16x16xf32>
    %133 = vector.extract_strided_slice %130 {offsets = [0, 16], sizes = [16, 16], strides = [1, 1]} : vector<16x128xf32> to vector<16x16xf32>
    %cst_60 = arith.constant dense<0.000000e+00> : vector<16x16xf32>
    %134 = tpu.matmul %133, %133, %cst_60 {dimension_numbers = #tpu.dot_dimension_numbers<[0], [0], [1], [1], [0, 1, 1, 1], [], []>} : vector<16x16xf32>, vector<16x16xf32>, vector<16x16xf32> -> vector<16x16xf32>
    %135 = vector.extract_strided_slice %130 {offsets = [0, 32], sizes = [16, 16], strides = [1, 1]} : vector<16x128xf32> to vector<16x16xf32>
    %cst_61 = arith.constant dense<0.000000e+00> : vector<16x16xf32>
    %136 = tpu.matmul %135, %135, %cst_61 {dimension_numbers = #tpu.dot_dimension_numbers<[0], [0], [1], [1], [0, 1, 1, 1], [], []>} : vector<16x16xf32>, vector<16x16xf32>, vector<16x16xf32> -> vector<16x16xf32>
    %137 = vector.extract_strided_slice %130 {offsets = [0, 48], sizes = [16, 16], strides = [1, 1]} : vector<16x128xf32> to vector<16x16xf32>
    %cst_62 = arith.constant dense<0.000000e+00> : vector<16x16xf32>
    %138 = tpu.matmul %137, %137, %cst_62 {dimension_numbers = #tpu.dot_dimension_numbers<[0], [0], [1], [1], [0, 1, 1, 1], [], []>} : vector<16x16xf32>, vector<16x16xf32>, vector<16x16xf32> -> vector<16x16xf32>
    %139 = vector.extract_strided_slice %130 {offsets = [0, 64], sizes = [16, 16], strides = [1, 1]} : vector<16x128xf32> to vector<16x16xf32>
    %cst_63 = arith.constant dense<0.000000e+00> : vector<16x16xf32>
    %140 = tpu.matmul %139, %139, %cst_63 {dimension_numbers = #tpu.dot_dimension_numbers<[0], [0], [1], [1], [0, 1, 1, 1], [], []>} : vector<16x16xf32>, vector<16x16xf32>, vector<16x16xf32> -> vector<16x16xf32>
    %141 = vector.extract_strided_slice %130 {offsets = [0, 80], sizes = [16, 16], strides = [1, 1]} : vector<16x128xf32> to vector<16x16xf32>
    %cst_64 = arith.constant dense<0.000000e+00> : vector<16x16xf32>
    %142 = tpu.matmul %141, %141, %cst_64 {dimension_numbers = #tpu.dot_dimension_numbers<[0], [0], [1], [1], [0, 1, 1, 1], [], []>} : vector<16x16xf32>, vector<16x16xf32>, vector<16x16xf32> -> vector<16x16xf32>
    %143 = vector.extract_strided_slice %130 {offsets = [0, 96], sizes = [16, 16], strides = [1, 1]} : vector<16x128xf32> to vector<16x16xf32>
    %cst_65 = arith.constant dense<0.000000e+00> : vector<16x16xf32>
    %144 = tpu.matmul %143, %143, %cst_65 {dimension_numbers = #tpu.dot_dimension_numbers<[0], [0], [1], [1], [0, 1, 1, 1], [], []>} : vector<16x16xf32>, vector<16x16xf32>, vector<16x16xf32> -> vector<16x16xf32>
    %145 = vector.extract_strided_slice %130 {offsets = [0, 112], sizes = [16, 16], strides = [1, 1]} : vector<16x128xf32> to vector<16x16xf32>
    %cst_66 = arith.constant dense<0.000000e+00> : vector<16x16xf32>
    %146 = tpu.matmul %145, %145, %cst_66 {dimension_numbers = #tpu.dot_dimension_numbers<[0], [0], [1], [1], [0, 1, 1, 1], [], []>} : vector<16x16xf32>, vector<16x16xf32>, vector<16x16xf32> -> vector<16x16xf32>
    %147 = tpu.concatenate %132, %134, %136, %138, %140, %142, %144, %146 in 1 : vector<16x16xf32>, vector<16x16xf32>, vector<16x16xf32>, vector<16x16xf32>, vector<16x16xf32>, vector<16x16xf32>, vector<16x16xf32>, vector<16x16xf32> -> vector<16x128xf32>
    %c0_67 = arith.constant 0 : index
    %c0_68 = arith.constant 0 : index
    %c0_69 = arith.constant 0 : index
    %148 = vector.load %arg5[%c0_67, %c0_68, %c0_69] : memref<1x16x128xf32, #tpu.memory_space<vmem>>, vector<1x16x128xf32>
    %149 = vector.shape_cast %148 : vector<1x16x128xf32> to vector<16x128xf32>
    %150 = vector.broadcast %99 : vector<1x128xf32> to vector<16x128xf32>
    %151 = arith.mulf %149, %150 : vector<16x128xf32>
    %152 = arith.addf %147, %151 : vector<16x128xf32>
    %153 = arith.negf %152 : vector<16x128xf32>
    %154 = math.exp %153 : vector<16x128xf32>
    %cst_70 = arith.constant 1.000000e+00 : f32
    %155 = vector.broadcast %cst_70 : f32 to vector<16x128xf32>
    %156 = arith.addf %155, %154 : vector<16x128xf32>
    %157 = arith.divf %155, %156 : vector<16x128xf32>
    %c0_71 = arith.constant 0 : index
    %c0_72 = arith.constant 0 : index
    %c0_73 = arith.constant 0 : index
    %158 = vector.load %arg12[%c0_71, %c0_72, %c0_73] : memref<1x16x128xf32, #tpu.memory_space<vmem>>, vector<1x16x128xf32>
    %159 = vector.shape_cast %158 : vector<1x16x128xf32> to vector<16x128xf32>
    %160 = vector.shape_cast %157 : vector<16x128xf32> to vector<1x16x128xf32>
    tpu.vector_store %arg12[%c0_71, %c0_72, %c0_73], %160 {strides = array<i32>} : memref<1x16x128xf32, #tpu.memory_space<vmem>>, vector<1x16x128xf32>,
    %c0_74 = arith.constant 0 : index
    %c0_75 = arith.constant 0 : index
    %161 = vector.load %arg13[%c0_74, %c0_75] : memref<8x128xf32, #tpu.memory_space<vmem>>, vector<8x4xf32>
    tpu.vector_store %arg13[%c0_74, %c0_75], %61 {strides = array<i32>} : memref<8x128xf32, #tpu.memory_space<vmem>>, vector<8x4xf32>,
    %c0_76 = arith.constant 0 : index
    %c4_77 = arith.constant 4 : index
    %162 = vector.load %arg13[%c0_76, %c4_77] : memref<8x128xf32, #tpu.memory_space<vmem>>, vector<8x32xf32>
    tpu.vector_store %arg13[%c0_76, %c4_77], %49 {strides = array<i32>} : memref<8x128xf32, #tpu.memory_space<vmem>>, vector<8x32xf32>,
    %c0_78 = arith.constant 0 : index
    %c36 = arith.constant 36 : index
    %163 = vector.load %arg13[%c0_78, %c36] : memref<8x128xf32, #tpu.memory_space<vmem>>, vector<8x32xf32>
    tpu.vector_store %arg13[%c0_78, %c36], %50 {strides = array<i32>} : memref<8x128xf32, #tpu.memory_space<vmem>>, vector<8x32xf32>,
    %c0_79 = arith.constant 0 : index
    %c68 = arith.constant 68 : index
    %164 = vector.load %arg13[%c0_79, %c68] : memref<8x128xf32, #tpu.memory_space<vmem>>, vector<8x1xf32>
    tpu.vector_store %arg13[%c0_79, %c68], %75 {strides = array<i32>} : memref<8x128xf32, #tpu.memory_space<vmem>>, vector<8x1xf32>,
    %c0_80 = arith.constant 0 : index
    %c69 = arith.constant 69 : index
    %165 = vector.load %arg13[%c0_80, %c69] : memref<8x128xf32, #tpu.memory_space<vmem>>, vector<8x32xf32>
    tpu.vector_store %arg13[%c0_80, %c69], %56 {strides = array<i32>} : memref<8x128xf32, #tpu.memory_space<vmem>>, vector<8x32xf32>,
    %cst_81 = arith.constant 0.000000e+00 : f32
    %166 = vector.broadcast %cst_81 : f32 to vector<8x27xf32>
    %c0_82 = arith.constant 0 : index
    %c101 = arith.constant 101 : index
    %167 = vector.load %arg13[%c0_82, %c101] : memref<8x128xf32, #tpu.memory_space<vmem>>, vector<8x27xf32>
    tpu.vector_store %arg13[%c0_82, %c101], %166 {strides = array<i32>} : memref<8x128xf32, #tpu.memory_space<vmem>>, vector<8x27xf32>,
    return
  }
  func.func @transform_0(%arg0: i32) -> (i32, i32) {
    %c0_i32 = arith.constant 0 : i32
    %c0_i32_0 = arith.constant 0 : i32
    return %arg0, %c0_i32 : i32, i32
  }
  func.func @transform_1(%arg0: i32) -> (i32, i32) {
    %c0_i32 = arith.constant 0 : i32
    %c0_i32_0 = arith.constant 0 : i32
    return %arg0, %c0_i32 : i32, i32
  }
  func.func @transform_2(%arg0: i32) -> (i32, i32, i32) {
    %c0_i32 = arith.constant 0 : i32
    %c0_i32_0 = arith.constant 0 : i32
    %c0_i32_1 = arith.constant 0 : i32
    return %arg0, %c0_i32, %c0_i32_0 : i32, i32, i32
  }
  func.func @transform_3(%arg0: i32) -> (i32, i32, i32) {
    %c0_i32 = arith.constant 0 : i32
    %c0_i32_0 = arith.constant 0 : i32
    %c0_i32_1 = arith.constant 0 : i32
    return %arg0, %c0_i32, %c0_i32_0 : i32, i32, i32
  }
  func.func @transform_4(%arg0: i32) -> (i32, i32, i32) {
    %c0_i32 = arith.constant 0 : i32
    %c0_i32_0 = arith.constant 0 : i32
    %c0_i32_1 = arith.constant 0 : i32
    return %arg0, %c0_i32, %c0_i32_0 : i32, i32, i32
  }
  func.func @transform_5(%arg0: i32) -> (i32, i32) {
    %c0_i32 = arith.constant 0 : i32
    %c0_i32_0 = arith.constant 0 : i32
    %c0_i32_1 = arith.constant 0 : i32
    return %c0_i32, %c0_i32_0 : i32, i32
  }
  func.func @transform_6(%arg0: i32) -> (i32, i32) {
    %c0_i32 = arith.constant 0 : i32
    %c0_i32_0 = arith.constant 0 : i32
    %c0_i32_1 = arith.constant 0 : i32
    return %c0_i32, %c0_i32_0 : i32, i32
  }
  func.func @transform_7(%arg0: i32) -> (i32, i32) {
    %c0_i32 = arith.constant 0 : i32
    %c0_i32_0 = arith.constant 0 : i32
    %c0_i32_1 = arith.constant 0 : i32
    return %c0_i32, %c0_i32_0 : i32, i32
  }
  func.func @transform_8(%arg0: i32) -> (i32, i32) {
    %c0_i32 = arith.constant 0 : i32
    %c0_i32_0 = arith.constant 0 : i32
    %c0_i32_1 = arith.constant 0 : i32
    return %c0_i32, %c0_i32_0 : i32, i32
  }
  func.func @transform_9(%arg0: i32) -> (i32, i32) {
    %c0_i32 = arith.constant 0 : i32
    %c0_i32_0 = arith.constant 0 : i32
    %c0_i32_1 = arith.constant 0 : i32
    return %c0_i32, %c0_i32_0 : i32, i32
  }
  func.func @transform_10(%arg0: i32) -> (i32, i32) {
    %c0_i32 = arith.constant 0 : i32
    %c0_i32_0 = arith.constant 0 : i32
    %c0_i32_1 = arith.constant 0 : i32
    return %c0_i32, %c0_i32_0 : i32, i32
  }
  func.func @transform_11(%arg0: i32) -> (i32, i32, i32) {
    %c0_i32 = arith.constant 0 : i32
    %c0_i32_0 = arith.constant 0 : i32
    %c0_i32_1 = arith.constant 0 : i32
    return %arg0, %c0_i32, %c0_i32_0 : i32, i32, i32
  }
  func.func @transform_12(%arg0: i32) -> (i32, i32) {
    %c0_i32 = arith.constant 0 : i32
    %c0_i32_0 = arith.constant 0 : i32
    return %arg0, %c0_i32 : i32, i32
  }
}

</mosaic_0001>

<bundles_post_ra>
// kernel: bridge_forward.1
= control target key start
LH: loop header
LB: loop body
LE: loop exit
PB: predicated region body
PF: predicated region fallthrough
CT: control target
= control target key end

     0   :  { %s3070_s21 = smov 0   ;;  %s3393_s0 = inlined_call_operand.vmem [shape: f32[16,128], index: 0, kind: input, shape index: {}]   ;;  %s3394_s1 = inlined_call_operand.vmem [shape: f32[16,32], index: 1, kind: input, shape index: {}]   ;;  %s3395_s2 = inlined_call_operand.vmem [shape: bf16[2,128,128], index: 2, kind: input, shape index: {}]   ;;  %s3396_s3 = inlined_call_operand.vmem [shape: f32[2,1,128], index: 3, kind: input, shape index: {}]   ;;  %s3397_s4 = inlined_call_operand.vmem [shape: f32[2,16,128], index: 4, kind: input, shape index: {}]   ;;  %s3398_s5 = inlined_call_operand.vmem [shape: bf16[128,64], index: 5, kind: input, shape index: {}]   ;;  %s3399_s6 = inlined_call_operand.vmem [shape: bf16[64,32], index: 6, kind: input, shape index: {}]   ;;  %s3400_s7 = inlined_call_operand.vmem [shape: bf16[32,64], index: 7, kind: input, shape index: {}]   ;;  %s3401_s8 = inlined_call_operand.vmem [shape: bf16[32,17], index: 8, kind: input, shape index: {}]   ;;  %s3402_s9 = inlined_call_operand.vmem [shape: bf16[32,4], index: 9, kind: input, shape index: {}]   ;;  %s3403_s10 = inlined_call_operand.vmem [shape: f32[40,128], index: 10, kind: input, shape index: {}]   ;;  %s3404_s11 = inlined_call_operand.vmem [shape: f32[2,16,128], index: 11, kind: output, shape index: {0}]   ;;  %s3405_s12 = inlined_call_operand.vmem [shape: f32[16,128], index: 12, kind: output, shape index: {1}]  }
   0x1 LB: > { %s2557_s22 = sadd.s32 4294967295, %s2986_s21   ;;  %p2561_p0 = scmp.ge.s32.totalorder %s2986_s21, 1  ;;  %s2986_s21 = sphi %s3070_s21, %s23_s21  }
   0x2   : > { %p401_p1 = scmp.lt.s32.totalorder %s2986_s21, 3 }
   0x4   : > { %p402_p2 = pnand %p2561_p0, %p401_p1 }
   0x5   : > { %v2944_v0 = vld [vmem:[%s3398_s5] sm:$0xff] (!%p402_p2)   ;;  %v2988_v1 = vmov (!%p402_p2), 0.0   ;;  %v2945_v2 = vld [vmem:[%s3398_s5 + $0x8] sm:$0xff] (!%p402_p2)   ;;  %vm2989_vm0 = vmmov (!%p402_p2), 0   ;;  %p463_p3 = scmp.lt.s32.totalorder (!%p402_p2), %s2557_s22, 1  ;;  %v2946_v3 = vld [vmem:[%s3398_s5 + $0x10] sm:$0xff] (!%p402_p2)  }
   0x6   : > { %405 = sbr.rel (%p402_p2) target bundleno = 2501 (0x9c5), region = 64  ;;  %2716 = vmatprep.subr.bf16.mxu0 (!%p402_p2), %v2988_v1  ;;  %2736 = vmatprep.subr.bf16.mxu1 (!%p402_p2), %v2988_v1  ;;  %v2947_v4 = vld [vmem:[%s3398_s5 + $0x18] sm:$0xff] (!%p402_p2)   ;;  %v2952_v5 = vld [vmem:[%s3399_s6] sm:$0xff] (!%p402_p2)   ;;  %v2949_v7 = vld [vmem:[%s3398_s5 + $0x28] sm:$0xff] (!%p402_p2)   ;;  %vm666_vm2 = vcmask (!%p402_p2), 523264   ;;  %vm744_vm4 = vcmask (!%p402_p2), 261120  }
   0x7   : > { %2717 = vmatpush3.bf16.msra.mxu0 (!%p402_p2), %v2944_v0  ;;  %2732 = vmatprep.mubr.msk.bf16.mxu0 (!%p402_p2), %vm2989_vm0, %v2988_v1  ;;  %v2948_v6 = vld [vmem:[%s3398_s5 + $0x20] sm:$0xff] (!%p402_p2)   ;;  %v2950_v8 = vld [vmem:[%s3398_s5 + $0x30] sm:$0xff] (!%p402_p2)   ;;  %v2951_v9 = vld [vmem:[%s3398_s5 + $0x38] sm:$0xff] (!%p402_p2)   ;;  %s2990_s20 = smov (!%p402_p2), 96   ;;  %vm2403_vm5 = vcmask (!%p402_p2), 31744   ;;  %s2992_s16 = smov (!%p402_p2), 32  }
   0x8   : > { %2718 = vmatprep.subr.bf16.mxu0 (!%p402_p2), %v2988_v1  ;;  %2744 = vmatprep.mubr.msk.bf16.mxu1 (!%p402_p2), %vm2989_vm0, %v2988_v1  ;;  %v2953_v12 = vld [vmem:[%s3399_s6 + $0x8] sm:$0xff] (!%p402_p2)   ;;  %v2954_v13 = vld [vmem:[%s3399_s6 + $0x10] sm:$0xff] (!%p402_p2)   ;;  %v2955_v14 = vld [vmem:[%s3399_s6 + $0x18] sm:$0xff] (!%p402_p2)   ;;  %s2993_s17 = smov (!%p402_p2), 16   ;;  %s2994_s18 = smov (!%p402_p2), 48   ;;  %vm976_vm7 = vcmask (!%p402_p2), 130048  }
   0x9   : > { %2737 = vmatpush3.bf16.msra.mxu1 (!%p402_p2), %v2952_v5  ;;  %v2571_v15 = vld [vmem:[%s3403_s10] ss:$0 sm:$0xff] (!%p402_p2)  ;;  %v2580_v20 = vld [vmem:[%s3403_s10 + $0x1] ss:$0 sm:$0xff] (!%p402_p2)  ;;  %v2581_v24 = vld [vmem:[%s3403_s10 + $0x2] ss:$0 sm:$0xff] (!%p402_p2) }
   0xa   : > { %2738 = vmatprep.subr.bf16.mxu1 (!%p402_p2), %v2988_v1  ;;  %v2956_v28 = vld [vmem:[%s3400_s7] sm:$0xff] (!%p402_p2)   ;;  %v2957_v29 = vld [vmem:[%s3400_s7 + $0x8] sm:$0xff] (!%p402_p2)   ;;  %v2991_v5 = vmov (!%p402_p2), 1   ;;  %s2995_s19 = smov (!%p402_p2), 64   ;;  %s2996_s24 = smov (!%p402_p2), 80   ;;  %vm979_vm8 = vcmask (!%p402_p2), 392192  }
   0xb   : > { %2719 = vmatpush3.bf16.msra.mxu0 (!%p402_p2), %v2945_v2  ;;  %v2582_v30 = vld [vmem:[%s3403_s10 + $0x3] ss:$0 sm:$0xff] (!%p402_p2)  ;;  %v2588_v35 = vld [vmem:[%s3403_s10 + $0x4] ss:$0 sm:$0xff] (!%p402_p2)  ;;  %v2589_v38 = vld [vmem:[%s3403_s10 + $0x5] ss:$0 sm:$0xff] (!%p402_p2)  ;;  %2940 = vset.pattern.permute.xlu1 (!%p402_p2), %v2991_v5 }
   0xc   : > { %2720 = vmatprep.subr.bf16.mxu0 (!%p402_p2), %v2988_v1  ;;  %v2958_v42 = vld [vmem:[%s3402_s9] sm:$0xff] (!%p402_p2)   ;;  %v2959_v44 = vld [vmem:[%s3402_s9 + $0x8] sm:$0xff] (!%p402_p2)   ;;  %vm982_vm9 = vcmask (!%p402_p2), 654336   ;;  %vm984_vm10 = vcmask (!%p402_p2), 785408   ;;  %vm986_vm11 = vcmask (!%p402_p2), 916480   ;;  %vm1190_vm13 = vcmask (!%p402_p2), 64512  }
   0xd   : > { %s3407_s22 = smov (!%p463_p3, %s2557_s22), 1  ;;  %2739 = vmatpush3.bf16.msra.mxu1 %v2953_v12  ;;  %v2960_v45 = vld [vmem:[%s3401_s8] sm:$0xff]   ;;  %v2961_v55 = vld [vmem:[%s3401_s8 + $0x8] sm:$0xff]  }
   0xe   : > { %s3101_s13 = sshll.u32 %s3407_s22, 3  ;;  %s2634_s14 = sshll.u32 %s3407_s22, 6  ;;  %2740 = vmatprep.subr.bf16.mxu1 %v2988_v1  ;;  %v2590_v46 = vld [vmem:[%s3403_s10 + $0x6] ss:$0 sm:$0xff]  ;;  %v2594_v62 = vld [vmem:[%s3403_s10 + $0x7] ss:$0 sm:$0xff] }
   0xf   : > { %2721 = vmatpush3.bf16.msra.mxu0 %v2946_v3  ;;  %s3116_s23 = scalar_lea.vmem %s3395_s2, %s2634_s14  ;;  %s466_s30 = scalar_lea.vmem %s3393_s0, %s3101_s13 }
  0x10   : > { %2722 = vmatprep.subr.bf16.mxu0 %v2988_v1  ;;  %v506_v10 = vld [vmem:[%s466_s30] sm:$0xff]  ;;  %s470_s26 = scalar_lea.vmem %s3394_s1, %s3101_s13  ;;  %s3228_s14 = scalar_lea.vmem %s3405_s12, %s3101_s13  ;;  %v2967_v12 = vld [vmem:[%s3116_s23 + $0x28] sm:$0xff]  }
  0x11   : > { %v507_v11 = vpack.c.bf16 %v506_v10, %v506_v10  ;;  %2741 = vmatpush3.bf16.msra.mxu1 %v2954_v13  ;;  %v788_v57 = vld [vmem:[%s470_s26] sm:$0xff]  ;;  %s3000_s13 = smov 120   ;;  %s478_s26 = scalar_lea.vmem %s3396_s3, %s3407_s22 }
  0x12   : > { %2742 = vmatprep.subr.bf16.mxu1 %v2988_v1  ;;  %v2966_v10 = vld [vmem:[%s3116_s23 + $0x20] sm:$0xff]  }
  0x13   : > { %2723 = vmatpush3.bf16.msra.mxu0 %v2947_v4 }
  0x14   : > { %2724 = vmatprep.subr.bf16.mxu0 %v2988_v1 }
  0x15   : > { %2743 = vmatpush3.bf16.msra.mxu1 %v2955_v14 }
  0x16   : > { %2748 = vmatprep.subr.bf16.mxu1 %v2988_v1 }
  0x17   : > { %2725 = vmatpush3.bf16.msra.mxu0 %v2948_v6  ;;  %v2962_v6 = vld [vmem:[%s3116_s23] sm:$0xff]  }
  0x18   : > { %2726 = vmatprep.subr.bf16.mxu0 %v2988_v1 }
  0x1b   : > { %2727 = vmatpush3.bf16.msra.mxu0 %v2949_v7  ;;  %v2963_v7 = vld [vmem:[%s3116_s23 + $0x8] sm:$0xff]  }
  0x1c   : > { %2728 = vmatprep.subr.bf16.mxu0 %v2988_v1 }
  0x1f   : > { %2729 = vmatpush3.bf16.msra.mxu0 %v2950_v8  ;;  %v2964_v8 = vld [vmem:[%s3116_s23 + $0x10] sm:$0xff]  }
  0x20   : > { %2730 = vmatprep.subr.bf16.mxu0 %v2988_v1 }
  0x23   : > { %2731 = vmatpush3.bf16.msra.mxu0 %v2951_v9  ;;  %v2965_v9 = vld [vmem:[%s3116_s23 + $0x18] sm:$0xff]  }
  0x24   : > { %2764 = vmatprep.subr.bf16.mxu0 %v2988_v1 }
  0x26   : > { %2733 = vmatmul.mubr.bf16.vlgmr.msra.gmra.mrb[0].mxu0 %v507_v11  ;;  %v2598_v11 = vld [vmem:[%s3403_s10 + $0x8] ss:$0 sm:$0xff] }
  0x27   : > { %2768 = vmatprep.mubr.msk.bf16.mxu0 %vm2989_vm0, %v2988_v1  ;;  %2765 = vmatpush3.bf16.msra.mxu0 %v2960_v45 }
  0x28   : > { %2766 = vmatprep.subr.bf16.mxu0 %v2988_v1 }
  0x2b   : > { %2767 = vmatpush3.bf16.msra.mxu0 %v2961_v55 }
  0x2c   : > { %2792 = vmatprep.subr.bf16.mxu0 %v2988_v1 }
  0xf9   : > { %v610_v16 = vpop.f32.mrb[0].mxu0 }
  0xfa   : > { %v611_v17 = vadd.f32 %v2571_v15, %v610_v16  ;;  %v2734_v18 = vpop.f32.mrb[1].mxu0 }
  0xfb   : > { %v613_v19 = vpop.f32.mrb[2].mxu0 }
  0xfc   : > { %vm616_vm1 = vcmp.ge.f32.partialorder %v611_v17, 0.0  ;;  %v617_v21 = vmul.f32 0.01, %v611_v17  ;;  %v2735_v22 = vpop.f32.mrb[3].mxu0 }
  0xfe   : > { %v618_v23 = vsel %vm616_vm1, %v611_v17, %v617_v21  ;;  %v2968_v17 = vld [vmem:[%s3116_s23 + $0x30] sm:$0xff]   ;;  %vm2411_vm1 = vcmask 556320  }
  0xff   : > { %v623_v25 = vmul.f32 %v2580_v20, %v618_v23  ;;  %v2969_v23 = vld [vmem:[%s3116_s23 + $0x38] sm:$0xff]   ;;  %s2997_s23 = smov 112  }
 0x101   : > { %v628_v26 = vadd.f32 %v2581_v24, %v623_v25 }
 0x103   : > { %v629_v27 = vpack.c.bf16 %v628_v26, %v628_v26 }
 0x105   : > { %2745 = vmatmul.mubr.msk.bf16.vlgmr.msra.gmra.mrb[0].mxu1 %vm666_vm2, %v629_v27 }
 0x106   : > { %2752 = vmatprep.mubr.msk.bf16.mxu1 %vm2989_vm0, %v2988_v1  ;;  %2749 = vmatpush3.bf16.msra.mxu1 %v2956_v28 }
 0x107   : > { %2750 = vmatprep.subr.bf16.mxu1 %v2988_v1 }
 0x10a   : > { %2751 = vmatpush3.bf16.msra.mxu1 %v2957_v29  ;;  %v505_v29 = vld [vmem:[%s3403_s10 + $0x20] sm:$0xff] }
 0x10b   : > { %2756 = vmatprep.subr.bf16.mxu1 %v2988_v1 }
 0x1d8   : > { %v704_v31 = vpop.f32.mrb[0].mxu1 }
 0x1d9   : > { %v705_v32 = vadd.f32 %v2582_v30, %v704_v31  ;;  %v2746_v33 = vpop.f32.mrb[1].mxu1  ;;  %v2998_v30 = vmov 2   ;;  %v2999_v31 = vmov 0  }
 0x1da   : > { %v707_v34 = vpop.f32.mrb[2].mxu1  ;;  %2939 = vset.pattern.permute.xlu0 %v2999_v31 }
 0x1db   : > { %vm710_vm3 = vcmp.ge.f32.partialorder %v705_v32, 0.0  ;;  %v711_v36 = vmul.f32 0.01, %v705_v32  ;;  %v2747_v37 = vpop.f32.mrb[3].mxu1 }
 0x1dd   : > { %v712_v39 = vsel %vm710_vm3, %v705_v32, %v711_v36  ;;  %vm2422_vm3 = vcmask 826920  }
 0x1de   : > { %v717_v40 = vmul.f32 %v2588_v35, %v712_v39 }
 0x1e0   : > { %v722_v41 = vadd.f32 %v2589_v38, %v717_v40 }
 0x1e2   : > { %v723_v43 = vpack.c.bf16 %v722_v41, %v722_v41 }
 0x1e4   : > { %2753 = vmatmul.mubr.msk.bf16.vlgmr.msra.gmra.mrb[4].mxu1 %vm744_vm4, %v723_v43 }
 0x1e5   : > { %2757 = vmatpush3.bf16.msra.mxu1 %v2958_v42  ;;  %2760 = vmatprep.mubr.msk.bf16.mxu1 %vm2989_vm0, %v2988_v1 }
 0x1e6   : > { %2758 = vmatprep.subr.bf16.mxu1 %v2988_v1 }
 0x1e9   : > { %2759 = vmatpush3.bf16.msra.mxu1 %v2959_v44 }
 0x1ea   : > { %2772 = vmatprep.subr.bf16.mxu1 %v2988_v1 }
 0x2b7   : > { %v782_v47 = vpop.f32.mrb[4].mxu1 }
 0x2b8   : > { %v3196_v48 = vadd.f32 %v2590_v46, %v782_v47  ;;  %v2754_v49 = vpop.f32.mrb[5].mxu1  ;;  %v503_v47 = vld [vmem:[%s3403_s10 + $0x10] sm:$0xff] }
 0x2b9   : > { %v785_v50 = vpop.f32.mrb[6].mxu1  ;;  %v504_v49 = vld [vmem:[%s3403_s10 + $0x18] sm:$0xff] }
 0x2ba   : > { %v789_v51 = vmul.f32 0.5, %v3196_v48  ;;  %v798_v52 = vpack.c.bf16 %v3196_v48, %v3196_v48  ;;  %v2755_v53 = vpop.f32.mrb[7].mxu1  ;;  %v1109_v50 = vlaneseq }
 0x2bb   : > { %v946_v53 = vld [vmem:[%s478_s26] sm:$0x1] }
 0x2bc   : > { %v790_v54 = vmul.f32 1.442695, %v789_v51  ;;  %2761 = vmatmul.mubr.msk.bf16.vlgmr.msra.gmra.mrb[8].mxu1 %vm744_vm4, %v798_v52  ;;  %v1110_v51 = vshrl.u32 %v1109_v50, 7 }
 0x2bd   : > { %2788 = vmatprep.mubr.msk.bf16.mxu1 %vm2989_vm0, %v2988_v1  ;;  %2773 = vmatpush3.bf16.msra.mxu1 %v2962_v6 }
 0x2be   : > { %2970 = vpow2.f32 %v790_v54  ;;  %2774 = vmatprep.subr.bf16.mxu1 %v2988_v1  ;;  %v3288_v55 = vsub.s32 0, %v1110_v51 }
 0x2c1   : > { %2775 = vmatpush3.bf16.msra.mxu1 %v2963_v7 }
 0x2c2   : > { %2776 = vmatprep.subr.bf16.mxu1 %v2988_v1 }
 0x2c5   : > { %2777 = vmatpush3.bf16.msra.mxu1 %v2964_v8 }
 0x2c6   : > { %2778 = vmatprep.subr.bf16.mxu1 %v2988_v1 }
 0x2c8   : > { %v2971_v56 = vpop.eup %2970 }
 0x2c9   : > { %793 = vrot.lane.b32.xlu0 %v2971_v56, %s2990_s20  ;;  %2779 = vmatpush3.bf16.msra.mxu1 %v2965_v9 }
 0x2ca   : > { %2780 = vmatprep.subr.bf16.mxu1 %v2988_v1 }
 0x2cd   : > { %2781 = vmatpush3.bf16.msra.mxu1 %v2966_v10 }
 0x2ce   : > { %2782 = vmatprep.subr.bf16.mxu1 %v2988_v1 }
 0x2d1   : > { %2783 = vmatpush3.bf16.msra.mxu1 %v2967_v12 }
 0x2d2   : > { %2784 = vmatprep.subr.bf16.mxu1 %v2988_v1 }
 0x2d5   : > { %2785 = vmatpush3.bf16.msra.mxu1 %v2968_v17 }
 0x2d6   : > { %2786 = vmatprep.subr.bf16.mxu1 %v2988_v1 }
 0x2d9   : > { %2787 = vmatpush3.bf16.msra.mxu1 %v2969_v23 }
 0x33b   : > { %v794_v58 = vpop.permute.xlu0 %793 }
 0x33c   : > { %v796_v59 = vmul.f32 %v794_v58, %v788_v57 }
 0x33e   : > { %v3214_v60 = vadd.f32 %v796_v59, %v3196_v48 }
 0x340   : > { %v862_v61 = vpack.c.bf16 %v3214_v60, %v3214_v60 }
 0x342   : > { %2769 = vmatmul.mubr.msk.bf16.vlgmr.msra.gmra.mrb[4].mxu0 %vm744_vm4, %v862_v61 }
 0x343   : > { %2808 = vmatprep.mubr.msk.bf16.mxu0 %vm2989_vm0, %v2988_v1  ;;  %2793 = vmatpush3.bf16.msra.mxu0 %v2962_v6  ;;  %vm2409_vm0 = vcmask 293920  }
 0x344   : > { %2794 = vmatprep.subr.bf16.mxu0 %v2988_v1 }
 0x347   : > { %2795 = vmatpush3.bf16.msra.mxu0 %v2963_v7 }
 0x348   : > { %2796 = vmatprep.subr.bf16.mxu0 %v2988_v1 }
 0x34b   : > { %2797 = vmatpush3.bf16.msra.mxu0 %v2964_v8 }
 0x34c   : > { %2798 = vmatprep.subr.bf16.mxu0 %v2988_v1 }
 0x34f   : > { %2799 = vmatpush3.bf16.msra.mxu0 %v2965_v9  ;;  %v3001_v9 = vmov 16  }
 0x350   : > { %2800 = vmatprep.subr.bf16.mxu0 %v2988_v1 }
 0x353   : > { %2801 = vmatpush3.bf16.msra.mxu0 %v2966_v10  ;;  %v1177_v10 = vrot.slane %v946_v53, %v3288_v55 }
 0x354   : > { %2802 = vmatprep.subr.bf16.mxu0 %v2988_v1 }
 0x357   : > { %2803 = vmatpush3.bf16.msra.mxu0 %v2967_v12 }
 0x358   : > { %2804 = vmatprep.subr.bf16.mxu0 %v2988_v1 }
 0x35b   : > { %2805 = vmatpush3.bf16.msra.mxu0 %v2968_v17 }
 0x35c   : > { %2806 = vmatprep.subr.bf16.mxu0 %v2988_v1 }
 0x35f   : > { %2807 = vmatpush3.bf16.msra.mxu0 %v2969_v23 }
 0x38f   : > { %v856_v63 = vpop.f32.mrb[8].mxu1 }
 0x390   : > { %v857_v0 = vadd.f32 %v2594_v62, %v856_v63  ;;  %v2762_v2 = vpop.f32.mrb[9].mxu1 }
 0x391   : > { %v859_v3 = vpop.f32.mrb[10].mxu1 }
 0x392   : > { %2404 = vst.msk [vmem:[%s3228_s14] sm:$0xff] %vm2403_vm5, %v857_v0  ;;  %v2763_v4 = vpop.f32.mrb[11].mxu1 }
 0x415   : > { %v920_v13 = vpop.f32.mrb[4].mxu0 }
 0x416   : > { %v3250_v14 = vadd.f32 %v2598_v11, %v920_v13  ;;  %v2770_v15 = vpop.f32.mrb[5].mxu0 }
 0x417   : > { %v923_v16 = vpop.f32.mrb[6].mxu0 }
 0x418   : > { %vm926_vm6 = vcmp.ge.f32.partialorder %v3250_v14, 0.0  ;;  %v927_v18 = vmul.f32 0.01, %v3250_v14  ;;  %v2771_v19 = vpop.f32.mrb[7].mxu0  ;;  %v929_v51 = vmax.f32 %v3250_v14, 0.0 }
 0x41a   : > { %v928_v20 = vsel %vm926_vm6, %v3250_v14, %v927_v18 }
 0x41b   : > { %v952_v21 = vrot.slane %v928_v20, 2  ;;  %v948_v22 = vrot.slane %v928_v20, 1  ;;  %v956_v24 = vrot.slane %v928_v20, 3  ;;  %v960_v25 = vrot.slane %v928_v20, 4 }
 0x41c   : > { %v964_v26 = vrot.slane %v928_v20, 5  ;;  %v968_v27 = vrot.slane %v928_v20, 6  ;;  %v972_v28 = vrot.slane %v928_v20, 7 }
 0x41d   : > { %953 = vrot.lane.b32.xlu1 %v952_v21, %s2992_s16  ;;  %949 = vrot.lane.b32.xlu0 %v948_v22, %s2993_s17 }
 0x421   : > { %957 = vrot.lane.b32.xlu1 %v956_v24, %s2994_s18  ;;  %961 = vrot.lane.b32.xlu0 %v960_v25, %s2995_s19 }
 0x425   : > { %965 = vrot.lane.b32.xlu1 %v964_v26, %s2996_s24  ;;  %969 = vrot.lane.b32.xlu0 %v968_v27, %s2990_s20 }
 0x429   : > { %973 = vrot.lane.b32.xlu1 %v972_v28, %s2997_s23  ;;  %1106 = vperm.xlu0 %2939, %v505_v29  }
 0x42d   : > { %1115 = vperm.xlu1 %2940, %v505_v29   ;;  %1270 = vrot.lane.b32.xlu0 %v503_v47, %s3000_s13 }
 0x42e   : > { %2942 = vset.pattern.permute.xlu0 %v3001_v9 }
 0x431   : > { %2941 = vset.pattern.permute.xlu1 %v2998_v30  ;;  %1182 = vperm.xlu0 %2942, %v503_v47  }
 0x432   : > { %1120 = vperm.xlu1 %2941, %v505_v29  }
 0x436   : > { %1272 = vrot.lane.b32.xlu1 %v504_v49, %s3000_s13 }
 0x437   : > { %2943 = vset.pattern.permute.xlu1 %v3001_v9 }
 0x43a   : > { %1187 = vperm.xlu1 %2943, %v504_v49  }
 0x48f   : > { %v954_v32 = vpop.permute.xlu1 %953  ;;  %v950_v33 = vpop.permute.xlu0 %949 }
 0x490   : > { %v977_v34 = vsel %vm976_vm7, %v928_v20, %v950_v33 }
 0x491   : > { %v978_v36 = vsel %vm744_vm4, %v977_v34, %v954_v32 }
 0x493   : > { %v958_v35 = vpop.permute.xlu1 %957  ;;  %v962_v37 = vpop.permute.xlu0 %961 }
 0x494   : > { %v980_v38 = vsel %vm979_vm8, %v978_v36, %v958_v35 }
 0x495   : > { %v981_v39 = vsel %vm666_vm2, %v980_v38, %v962_v37 }
 0x497   : > { %v966_v40 = vpop.permute.xlu1 %965  ;;  %v970_v42 = vpop.permute.xlu0 %969 }
 0x498   : > { %v983_v41 = vsel %vm982_vm9, %v981_v39, %v966_v40 }
 0x499   : > { %v985_v43 = vsel %vm984_vm10, %v983_v41, %v970_v42 }
 0x49b   : > { %v974_v44 = vpop.permute.xlu1 %973 }
 0x49c   : > { %v987_v45 = vsel %vm986_vm11, %v985_v43, %v974_v44 }
 0x49d   : > { %v1014_v46 = vpack.c.bf16 %v987_v45, %v987_v45  ;;  %v1126_v0 = vrot.slane %v987_v45, %v3288_v55 }
 0x49f   : > { %2789 = vmatmul.mubr.bf16.vlgmr.msra.gmra.mrb[12].mxu1 %v1014_v46 }
 0x4a0   : > { %2814 = vmatprep.mubr.msk.f32.mxu1 %vm1190_vm13, %v503_v47 }
 0x4a8   : > { %v1107_v59 = vpop.permute.xlu0 %1106 }
 0x4ac   : > { %v1116_v52 = vpop.permute.xlu1 %1115  ;;  %v1271_v17 = vpop.permute.xlu0 %1270 }
 0x4b0   : > { %v1183_v20 = vpop.permute.xlu0 %1182 }
 0x4b1   : > { %v1121_v63 = vpop.permute.xlu1 %1120 }
 0x4b2   : > { %v1127_v3 = vmul.f32 %v1126_v0, %v1121_v63 }
 0x4b5   : > { %v1273_v18 = vpop.permute.xlu1 %1272 }
 0x4b9   : > { %v1188_v19 = vpop.permute.xlu1 %1187 }
 0x572   : > { %v1097_v54 = vpop.f32.mrb[12].mxu1 }
 0x573   : > { %v1103_v56 = vmul.f32 %v1097_v54, %v946_v53  ;;  %v2790_v57 = vpop.f32.mrb[13].mxu1 }
 0x574   : > { %v1100_v58 = vpop.f32.mrb[14].mxu1 }
 0x575   : > { %v2791_v61 = vpop.f32.mrb[15].mxu1  ;;  %v1112_v62 = vrot.slane %v1103_v56, %v3288_v55 }
 0x577   : > { %v1113_v2 = vmul.f32 %v1112_v62, %v1107_v59 }
 0x579   : > { %v1118_v4 = vadd.f32 %v1116_v52, %v1113_v2 }
 0x57b   : > { %v1128_v5 = vadd.f32 %v1127_v3, %v1118_v4 }
 0x57d   : > { %vm1129_vm12 = vcmp.ge.f32.partialorder %v1128_v5, 0.0  ;;  %v1130_v6 = vmul.f32 0.01, %v1128_v5 }
 0x57f   : > { %v1131_v7 = vsel %vm1129_vm12, %v1128_v5, %v1130_v6 }
 0x580   : > { %v1132_v8 = vpack.c.bf16 %v1131_v7, %v1131_v7 }
 0x582   : > { %2809 = vmatmul.mubr.bf16.vlgmr.msra.gmra.mrb[8].mxu0 %v1132_v8 }
 0x655   : > { %v1167_v11 = vpop.f32.mrb[8].mxu0 }
 0x656   : > { %v1179_v12 = vmul.f32 %v1177_v10, %v1167_v11  ;;  %v2810_v13 = vpop.f32.mrb[9].mxu0 }
 0x657   : > { %v1170_v15 = vpop.f32.mrb[10].mxu0 }
 0x658   : > { %v2811_v16 = vpop.f32.mrb[11].mxu0  ;;  %2812 = vmatprep.subr.mxu1 %v1179_v12 }
 0x659   : > { %2813 = vmatpush3.msra.mxu1 %v1179_v12 }
 0x65a   : > { %2815 = vmatmul.mubr.msk.f32.vlgmr.msra.gmra.mrb[16].mxu1 %vm1190_vm13, %v504_v49  ;;  %2817 = vmatprep.subr.mxu1 %v1131_v7 }
 0x65b   : > { %2818 = vmatpush3.msra.mxu1 %v1131_v7  ;;  %2819 = vmatprep.mubr.msk.f32.mxu1 %vm1190_vm13, %v1271_v17 }
 0x662   : > { %2820 = vmatmul.mubr.msk.f32.vlgmr.msra.gmra.mrb[16].mxu1 %vm1190_vm13, %v1273_v18 }
 0x735   : > { %v2821_v21 = vpop.f32.mrb[16].mxu1 }
 0x736   : > { %v2910_v22 = vadd.f32 %v2821_v21, %v1188_v19  ;;  %v1344_v23 = vpop.f32.mrb[17].mxu1 }
 0x737   : > { %v2911_v24 = vadd.f32 %v1344_v23, %v1183_v20 }
 0x738   : > { %vm1356_vm14 = vcmp.ge.f32.partialorder %v2910_v22, 0.0  ;;  %v1358_v25 = vmul.f32 0.01, %v2910_v22 }
 0x739   : > { %vm1355_vm15 = vcmp.ge.f32.partialorder %v2911_v24, 0.0  ;;  %v1357_v26 = vmul.f32 0.01, %v2911_v24 }
 0x73a   : > { %v1360_v27 = vsel %vm1356_vm14, %v2910_v22, %v1358_v25 }
 0x73b   : > { %v1359_v28 = vsel %vm1355_vm15, %v2911_v24, %v1357_v26  ;;  %1597 = vrot.lane.b32.xlu1 %v1360_v27, %s2990_s20  ;;  %1478 = vrot.lane.b32.xlu0 %v1360_v27, %s2997_s23 }
 0x73c   : > { %v2878_v29 = vpack.c.bf16 %v1360_v27, %v1359_v28 }
 0x73e   : > { %2879 = vmatprep.subr.bf16.mxu0 %v2878_v29 }
 0x73f   : > { %1835 = vrot.lane.b32.xlu1 %v1360_v27, %s2995_s19  ;;  %1716 = vrot.lane.b32.xlu0 %v1360_v27, %s2996_s24 }
 0x740   : > { %2881 = vmatpush3.bf16.msra.mxu0 %v2878_v29 }
 0x743   : > { %2073 = vrot.lane.b32.xlu1 %v1360_v27, %s2992_s16  ;;  %1954 = vrot.lane.b32.xlu0 %v1360_v27, %s2994_s18 }
 0x747   : > { %1714 = vrot.lane.b32.xlu0 %v1359_v28, %s2996_s24  ;;  %1476 = vrot.lane.b32.xlu1 %v1359_v28, %s2997_s23 }
 0x74b   : > { %1952 = vrot.lane.b32.xlu0 %v1359_v28, %s2994_s18  ;;  %1595 = vrot.lane.b32.xlu1 %v1359_v28, %s2990_s20 }
 0x74f   : > { %2190 = vrot.lane.b32.xlu0 %v1359_v28, %s2993_s17  ;;  %1833 = vrot.lane.b32.xlu1 %v1359_v28, %s2995_s19 }
 0x753   : > { %2192 = vrot.lane.b32.xlu0 %v1360_v27, %s2993_s17  ;;  %2071 = vrot.lane.b32.xlu1 %v1359_v28, %s2992_s16 }
 0x77c   : > { %1361 = vxpose.xlu1.b32.start [1/2] (short) (narrow) %v1359_v28, 16 }
 0x780   : > { %1362 = vxpose.xlu1.b32.end [2/2] (short) (narrow) %v1360_v27, 16 }
 0x7ad   : > { %v1598_v30 = vpop.permute.xlu1 %1597  ;;  %v1479_v31 = vpop.permute.xlu0 %1478 }
 0x7b1   : > { %v1836_v32 = vpop.permute.xlu1 %1835  ;;  %v1717_v33 = vpop.permute.xlu0 %1716 }
 0x7b5   : > { %v2074_v34 = vpop.permute.xlu1 %2073  ;;  %v1955_v35 = vpop.permute.xlu0 %1954 }
 0x7b9   : > { %v1715_v36 = vpop.permute.xlu0 %1714  ;;  %v1477_v37 = vpop.permute.xlu1 %1476 }
 0x7ba   : > { %v2882_v38 = vpack.c.bf16 %v1479_v31, %v1477_v37  ;;  %1720 = vxpose.xlu1.b32.start [1/2] (short) (narrow) %v1715_v36, 16  ;;  %1482 = vxpose.xlu0.b32.start [1/2] (short) (narrow) %v1477_v37, 16  ;;  %v2890_v39 = vpack.c.bf16 %v1717_v33, %v1715_v36 }
 0x7bc   : > { %2883 = vmatprep.subr.bf16.mxu1 %v2882_v38 }
 0x7bd   : > { %v1953_v40 = vpop.permute.xlu0 %1952  ;;  %2885 = vmatpush3.bf16.msra.mxu1 %v2882_v38  ;;  %v1596_v41 = vpop.permute.xlu1 %1595 }
 0x7be   : > { %v2898_v42 = vpack.c.bf16 %v1955_v35, %v1953_v40  ;;  %v2886_v43 = vpack.c.bf16 %v1598_v30, %v1596_v41  ;;  %1721 = vxpose.xlu1.b32.end [2/2] (short) (narrow) %v1717_v33, 16  ;;  %2891 = vmatprep.subr.bf16.mxu1 %v2890_v39 }
 0x7bf   : > { %1483 = vxpose.xlu0.b32.end [2/2] (short) (narrow) %v1479_v31, 16 }
 0x7c0   : > { %2887 = vmatprep.subr.bf16.mxu0 %v2886_v43 }
 0x7c1   : > { %v1834_v44 = vpop.permute.xlu1 %1833  ;;  %v2191_v47 = vpop.permute.xlu0 %2190 }
 0x7c2   : > { %1958 = vxpose.xlu1.b32.start [1/2] (short) (narrow) %v1953_v40, 16  ;;  %v2894_v53 = vpack.c.bf16 %v1836_v32, %v1834_v44 }
 0x7c3   : > { %1601 = vxpose.xlu0.b32.start [1/2] (short) (narrow) %v1596_v41, 16 }
 0x7c5   : > { %v2072_v45 = vpop.permute.xlu1 %2071  ;;  %v2193_v49 = vpop.permute.xlu0 %2192 }
 0x7c6   : > { %v2902_v46 = vpack.c.bf16 %v2074_v34, %v2072_v45  ;;  %1959 = vxpose.xlu1.b32.end [2/2] (short) (narrow) %v1955_v35, 16  ;;  %v2906_v62 = vpack.c.bf16 %v2193_v49, %v2191_v47 }
 0x7c7   : > { %1602 = vxpose.xlu0.b32.end [2/2] (short) (narrow) %v1598_v30, 16 }
 0x7ca   : > { %2196 = vxpose.xlu1.b32.start [1/2] (short) (narrow) %v2191_v47, 16 }
 0x7cb   : > { %1839 = vxpose.xlu0.b32.start [1/2] (short) (narrow) %v1834_v44, 16 }
 0x7ce   : > { %2197 = vxpose.xlu1.b32.end [2/2] (short) (narrow) %v2193_v49, 16 }
 0x7cf   : > { %1840 = vxpose.xlu0.b32.end [2/2] (short) (narrow) %v1836_v32, 16 }
 0x7d3   : > { %2077 = vxpose.xlu0.b32.start [1/2] (short) (narrow) %v2072_v45, 16 }
 0x7d7   : > { %2078 = vxpose.xlu0.b32.end [2/2] (short) (narrow) %v2074_v34, 16 }
 0x7fc   : > { %v1377_v50 = vpop.trf.xlu1 }
 0x7fd   : > { %2826 = vmatprep.mubr.msk.f32.mxu0 %vm976_vm7, %v1377_v50 }
 0x800   : > { %990 = vperm.xlu0 %2942, %v929_v51   ;;  %v1378_v52 = vpop.trf.xlu1 }
 0x801   : > { %2827 = vmatmul.mubr.msk.f32.vlgmr.msra.gmra.mrb[12].mxu0 %vm976_vm7, %v1378_v52 }
 0x802   : > { %2889 = vmatpush3.bf16.msra.mxu0 %v2886_v43 }
 0x803   : > { %2895 = vmatprep.subr.bf16.mxu0 %v2894_v53 }
 0x83a   : > { %v1736_v54 = vpop.trf.xlu1 }
 0x83b   : > { %v1498_v56 = vpop.trf.xlu0 }
 0x83c   : > { %2833 = vmatprep.mubr.msk.f32.mxu1 %vm976_vm7, %v1498_v56 }
 0x83e   : > { %v1737_v57 = vpop.trf.xlu1 }
 0x83f   : > { %v1499_v58 = vpop.trf.xlu0 }
 0x840   : > { %2834 = vmatmul.mubr.msk.f32.vlgmr.msra.gmra.mrb[18].mxu1 %vm976_vm7, %v1499_v58 }
 0x841   : > { %2893 = vmatpush3.bf16.msra.mxu1 %v2890_v39  ;;  %2847 = vmatprep.mubr.msk.f32.mxu1 %vm976_vm7, %v1736_v54 }
 0x842   : > { %2899 = vmatprep.subr.bf16.mxu1 %v2898_v42  ;;  %v1974_v59 = vpop.trf.xlu1 }
 0x843   : > { %v1617_v61 = vpop.trf.xlu0 }
 0x844   : > { %2848 = vmatmul.mubr.msk.f32.vlgmr.msra.gmra.mrb[20].mxu1 %vm976_vm7, %v1737_v57  ;;  %2840 = vmatprep.mubr.msk.f32.mxu0 %vm976_vm7, %v1617_v61 }
 0x845   : > { %2901 = vmatpush3.bf16.msra.mxu1 %v2898_v42  ;;  %2861 = vmatprep.mubr.msk.f32.mxu1 %vm976_vm7, %v1974_v59 }
 0x846   : > { %2907 = vmatprep.subr.bf16.mxu1 %v2906_v62  ;;  %v1975_v63 = vpop.trf.xlu1 }
 0x847   : > { %v1618_v0 = vpop.trf.xlu0 }
 0x848   : > { %2841 = vmatmul.mubr.msk.f32.vlgmr.msra.gmra.mrb[14].mxu0 %vm976_vm7, %v1618_v0  ;;  %2862 = vmatmul.mubr.msk.f32.vlgmr.msra.gmra.mrb[22].mxu1 %vm976_vm7, %v1975_v63 }
 0x849   : > { %2897 = vmatpush3.bf16.msra.mxu0 %v2894_v53  ;;  %2909 = vmatpush3.bf16.msra.mxu1 %v2906_v62 }
 0x84a   : > { %2903 = vmatprep.subr.bf16.mxu0 %v2902_v46  ;;  %v2212_v2 = vpop.trf.xlu1 }
 0x84b   : > { %v1855_v3 = vpop.trf.xlu0  ;;  %2875 = vmatprep.mubr.msk.f32.mxu1 %vm976_vm7, %v2212_v2 }
 0x84c   : > { %2854 = vmatprep.mubr.msk.f32.mxu0 %vm976_vm7, %v1855_v3 }
 0x84e   : > { %v2213_v4 = vpop.trf.xlu1 }
 0x84f   : > { %v1856_v5 = vpop.trf.xlu0  ;;  %2876 = vmatmul.mubr.msk.f32.vlgmr.msra.gmra.mrb[24].mxu1 %vm976_vm7, %v2213_v4 }
 0x850   : > { %2855 = vmatmul.mubr.msk.f32.vlgmr.msra.gmra.mrb[16].mxu0 %vm976_vm7, %v1856_v5 }
 0x851   : > { %2905 = vmatpush3.bf16.msra.mxu0 %v2902_v46 }
 0x853   : > { %v2093_v6 = vpop.trf.xlu0 }
 0x854   : > { %2868 = vmatprep.mubr.msk.f32.mxu0 %vm976_vm7, %v2093_v6 }
 0x857   : > { %v2094_v7 = vpop.trf.xlu0 }
 0x858   : > { %2869 = vmatmul.mubr.msk.f32.vlgmr.msra.gmra.mrb[18].mxu0 %vm976_vm7, %v2094_v7 }
 0x87f   : > { %v991_v25 = vpop.permute.xlu0 %990 }
 0x880   : > { %v993_v26 = vrot.slane %v991_v25, 1  ;;  %v995_v27 = vrot.slane %v991_v25, 2  ;;  %v997_v31 = vrot.slane %v991_v25, 3  ;;  %v999_v34 = vrot.slane %v991_v25, 4 }
 0x881   : > { %v1001_v36 = vrot.slane %v991_v25, 5  ;;  %v1003_v40 = vrot.slane %v991_v25, 6  ;;  %v1005_v44 = vrot.slane %v991_v25, 7 }
 0x882   : > { %v1007_v28 = vsel %vm976_vm7, %v991_v25, %v993_v26 }
 0x883   : > { %v1008_v30 = vsel %vm744_vm4, %v1007_v28, %v995_v27 }
 0x8d4   : > { %v3330_v8 = vpop.f32.mrb[12].mxu0 }
 0x8d5   : > { %v1465_v9 = vpop.f32.mrb[13].mxu0 }
 0x913   : > { %v2835_v10 = vpop.f32.mrb[18].mxu1 }
 0x914   : > { %2313 = vrot.lane.b32.xlu1 %v2835_v10, %s2993_s17  ;;  %v1586_v11 = vpop.f32.mrb[19].mxu1 }
 0x917   : > { %v2849_v12 = vpop.f32.mrb[20].mxu1 }
 0x918   : > { %v1824_v13 = vpop.f32.mrb[21].mxu1 }
 0x91b   : > { %v2842_v15 = vpop.f32.mrb[14].mxu0  ;;  %v2863_v16 = vpop.f32.mrb[22].mxu1 }
 0x91c   : > { %2321 = vrot.lane.b32.xlu1 %v2842_v15, %s2992_s16  ;;  %v1705_v17 = vpop.f32.mrb[15].mxu0  ;;  %v2062_v18 = vpop.f32.mrb[23].mxu1 }
 0x91d   : > { %2319 = vrot.lane.b32.xlu0 %v1705_v17, %s2992_s16  ;;  %s3002_s16 = smov 4  }
 0x920   : > { %2311 = vrot.lane.b32.xlu1 %v1586_v11, %s2993_s17  ;;  %s3003_s17 = smov 52  }
 0x921   : > { %2327 = vrot.lane.b32.xlu0 %v1824_v13, %s2994_s18 }
 0x922   : > { %v2877_v19 = vpop.f32.mrb[24].mxu1 }
 0x923   : > { %v2856_v20 = vpop.f32.mrb[16].mxu0  ;;  %v2300_v21 = vpop.f32.mrb[25].mxu1 }
 0x924   : > { %2329 = vrot.lane.b32.xlu1 %v2849_v12, %s2994_s18  ;;  %v1943_v22 = vpop.f32.mrb[17].mxu0  ;;  %s3004_s18 = smov 69  }
 0x925   : > { %2335 = vrot.lane.b32.xlu0 %v1943_v22, %s2995_s19 }
 0x928   : > { %2337 = vrot.lane.b32.xlu1 %v2856_v20, %s2995_s19 }
 0x929   : > { %2343 = vrot.lane.b32.xlu0 %v2062_v18, %s2996_s24 }
 0x92b   : > { %v2870_v23 = vpop.f32.mrb[18].mxu0 }
 0x92c   : > { %2345 = vrot.lane.b32.xlu1 %v2863_v16, %s2996_s24  ;;  %v2181_v24 = vpop.f32.mrb[19].mxu0 }
 0x92d   : > { %2351 = vrot.lane.b32.xlu0 %v2181_v24, %s2990_s20 }
 0x930   : > { %2353 = vrot.lane.b32.xlu1 %v2870_v23, %s2990_s20  ;;  %s2635_s20 = sshll.u32 %s3407_s22, 4 }
 0x931   : > { %2359 = vrot.lane.b32.xlu0 %v2300_v21, %s2997_s23  ;;  %s488_s29 = scalar_lea.vmem %s3404_s11, %s2635_s20 }
 0x934   : > { %2361 = vrot.lane.b32.xlu1 %v2877_v19, %s2997_s23  ;;  %s483_s23 = scalar_lea.vmem %s3397_s4, %s2635_s20 }
 0x935   : > { %2406 = vrot.lane.b32.xlu0 %v3196_v48, %s3002_s16  ;;  %v1009_v48 = vsel %vm979_vm8, %v1008_v30, %v997_v31  ;;  %v2379_v53 = vld [vmem:[%s483_s23] sm:$0xff]  ;;  %v2380_v0 = vld [vmem:[%s483_s23 + $0x8] sm:$0xff] }
 0x938   : > { %2413 = vrot.lane.b32.xlu1 %v929_v51, %s3003_s17 }
 0x939   : > { %2419 = vrot.lane.b32.xlu0 %v3214_v60, %s3004_s18  ;;  %v1010_v60 = vsel %vm666_vm2, %v1009_v48, %v999_v34 }
 0x93a   : > { %v1011_v38 = vsel %vm982_vm9, %v1010_v60, %v1001_v36 }
 0x93b   : > { %v1012_v41 = vsel %vm984_vm10, %v1011_v38, %v1003_v40 }
 0x93c   : > { %v1013_v46 = vsel %vm986_vm11, %v1012_v41, %v1005_v44 }
 0x93d   : > { %v2384_v51 = vrot.slane %v1013_v46, %v3288_v55 }
 0x93f   : > { %v2385_v63 = vmul.f32 %v2384_v51, %v2379_v53  ;;  %v2386_v7 = vmul.f32 %v2384_v51, %v2380_v0 }
 0x986   : > { %v2314_v29 = vpop.permute.xlu1 %2313 }
 0x987   : > { %v2366_v54 = vsel %vm976_vm7, %v3330_v8, %v2314_v29 }
 0x98e   : > { %v2322_v32 = vpop.permute.xlu1 %2321 }
 0x98f   : > { %v2320_v33 = vpop.permute.xlu0 %2319  ;;  %v2368_v57 = vsel %vm744_vm4, %v2366_v54, %v2322_v32 }
 0x992   : > { %v2312_v14 = vpop.permute.xlu1 %2311 }
 0x993   : > { %v2328_v35 = vpop.permute.xlu0 %2327  ;;  %v2365_v42 = vsel %vm976_vm7, %v1465_v9, %v2312_v14 }
 0x994   : > { %v2367_v47 = vsel %vm744_vm4, %v2365_v42, %v2320_v33  ;;  %vm2424_vm4 = vcmask 1048360  }
 0x995   : > { %v2369_v52 = vsel %vm979_vm8, %v2367_v47, %v2328_v35 }
 0x996   : > { %v2330_v37 = vpop.permute.xlu1 %2329 }
 0x997   : > { %v2336_v39 = vpop.permute.xlu0 %2335  ;;  %v2370_v61 = vsel %vm979_vm8, %v2368_v57, %v2330_v37 }
 0x998   : > { %v2371_v56 = vsel %vm666_vm2, %v2369_v52, %v2336_v39 }
 0x99a   : > { %v2338_v43 = vpop.permute.xlu1 %2337 }
 0x99b   : > { %v2344_v45 = vpop.permute.xlu0 %2343  ;;  %v2372_v2 = vsel %vm666_vm2, %v2370_v61, %v2338_v43  ;;  %vm2416_vm2 = vcmask 564768  }
 0x99c   : > { %v2373_v58 = vsel %vm982_vm9, %v2371_v56, %v2344_v45 }
 0x99e   : > { %v2346_v49 = vpop.permute.xlu1 %2345 }
 0x99f   : > { %v2352_v50 = vpop.permute.xlu0 %2351  ;;  %v2374_v4 = vsel %vm982_vm9, %v2372_v2, %v2346_v49 }
 0x9a0   : > { %v2375_v62 = vsel %vm984_vm10, %v2373_v58, %v2352_v50 }
 0x9a2   : > { %v2354_v59 = vpop.permute.xlu1 %2353 }
 0x9a3   : > { %v2360_v55 = vpop.permute.xlu0 %2359  ;;  %v2376_v6 = vsel %vm984_vm10, %v2374_v4, %v2354_v59 }
 0x9a4   : > { %v2377_v3 = vsel %vm986_vm11, %v2375_v62, %v2360_v55 }
 0x9a5   : > { %v2387_v5 = vadd.f32 %v2385_v63, %v2377_v3 }
 0x9a6   : > { %v2362_v8 = vpop.permute.xlu1 %2361 }
 0x9a7   : > { %v2630_v9 = vmul.f32 -1.442695, %v2387_v5  ;;  %v2378_v10 = vsel %vm986_vm11, %v2376_v6, %v2362_v8  ;;  %v2407_v11 = vpop.permute.xlu0 %2406 }
 0x9a8   : > { %v2388_v12 = vadd.f32 %v2386_v7, %v2378_v10  ;;  %2410 = vst.msk [vmem:[%s3228_s14] sm:$0xff] %vm2409_vm0, %v2407_v11 }
 0x9a9   : > { %2972 = vpow2.f32 %v2630_v9  ;;  %2412 = vst.msk [vmem:[%s3228_s14] sm:$0xff] %vm2411_vm1, %v2407_v11 }
 0x9aa   : > { %v2631_v13 = vmul.f32 -1.442695, %v2388_v12  ;;  %v2414_v15 = vpop.permute.xlu1 %2413 }
 0x9ab   : > { %2417 = vst.msk [vmem:[%s3228_s14] sm:$0xff] %vm2416_vm2, %v2414_v15  ;;  %v2420_v16 = vpop.permute.xlu0 %2419 }
 0x9ac   : > { %2974 = vpow2.f32 %v2631_v13  ;;  %2423 = vst.msk [vmem:[%s3228_s14] sm:$0xff] %vm2422_vm3, %v2420_v16 }
 0x9ad   : > { %2425 = vst.msk [vmem:[%s3228_s14] sm:$0xff] %vm2424_vm4, %v2988_v1 }
 0x9b3   : > { %v2973_v17 = vpop.eup %2972 }
 0x9b4   : > { %v2395_v18 = vadd.f32 1.0, %v2973_v17 }
 0x9b6   : > { %v2975_v19 = vpop.eup %2974  ;;  %2976 = vrcp.f32 %v2395_v18 }
 0x9b7   : > { %v2396_v20 = vadd.f32 1.0, %v2975_v19 }
 0x9b9   : > { %2978 = vrcp.f32 %v2396_v20 }
 0x9c0   : > { %v2977_v21 = vpop.eup %2976 }
 0x9c1   : > { %2401 = vst [vmem:[%s488_s29] sm:$0xff] %v2977_v21 }
 0x9c3   : > { %v2979_v22 = vpop.eup %2978 }
 0x9c4   : > { %2402 = vst [vmem:[%s488_s29 + $0x8] sm:$0xff] %v2979_v22 }
 0x9c5 PF: > { %s23_s21 = sadd.s32 1, %s2986_s21  }
 0x9c6   : > { %p20_p4 = scmp.ge.s32.totalorder %s23_s21, 4  }
 0x9c8   :  { %22 = sbr.rel (!%p20_p4) target bundleno = 1 (0x1), region = 118 }

</bundles_post_ra>
